<compile_context>
chip_gen: v7x
topology: tpu7x:2x2x1
jax: 0.10.0
libtpu: 0.0.40
codegen_flags: <defaults>
</compile_context>

<pallas_src>
import math
import functools

import jax
import jax.numpy as jnp
from jax.experimental import pallas as pl
from jax.experimental.pallas import tpu as pltpu

# Small, module-consistent sizes.
VOCAB = 100
EMBED = 32
HIDDEN = 32
N_LAYERS = 2
SEQ = 8
BATCH = 4


# ----------------------------------------------------------------------------
# Fused kernel: embedding gather + 2 bidirectional LSTM layers + attention + fc.
# ----------------------------------------------------------------------------
def _fused_bilstm_attn_kernel(tok_ref, tbl_ref,
                              wih0_ref, whh0_ref, b0_ref,
                              wih1_ref, whh1_ref, b1_ref,
                              wfc_ref, bfc_ref,
                              logit_ref,
                              *, T, B, H, V):
    H2, H4, H6, H8 = 2 * H, 4 * H, 6 * H, 8 * H
    TB = T * B

    # ---- Embedding gather fused in as a one-hot matmul (no XLA gather op). ----
    tok = tok_ref[...]                                              # (T*B, 1) int32
    iota = jax.lax.broadcasted_iota(jnp.int32, (TB, V), 1)
    onehot = jnp.where(iota == tok, 1.0, 0.0)                       # (T*B, V) f32
    emb = jnp.dot(onehot, tbl_ref[...],
                  preferred_element_type=jnp.float32)               # (T*B, E)
    # dropout(embedding) p=0.5: identity in eval mode.

    # Hoist all weight / bias loads out of the unrolled loops.
    whh0 = whh0_ref[...]                                            # (2H, 8H) bf16
    whh1 = whh1_ref[...]                                            # (2H, 8H) bf16
    b0 = b0_ref[...]                                                # (1, 8H) f32
    b1 = b1_ref[...]                                                # (1, 8H) f32

    def bidir_layer(xs_in, wih, whh, b):
        """One bidirectional LSTM layer with both directions fused.

        xs_in: list of T (B, D) f32 timestep inputs.
        Weights are block-diagonal & gate-interleaved with column order
        [i_f i_r | f_f f_r | o_f o_r | g_f g_r]; the i/f/o columns (and bias)
        were pre-scaled by 0.5 at pack time, so sigmoid(z) = 0.5*(1 + tanh(.))
        needs only the one tanh already applied to the whole gate row.
        h/c carry both directions as [fwd | rev].
        """
        # Hoisted input matmul: all timesteps, both directions, one MXU pass,
        # bias folded in.  (Off the serial critical path, so kept f32.)
        x_cat = jnp.concatenate(
            [jnp.concatenate([xs_in[t], xs_in[T - 1 - t]], axis=-1)
             for t in range(T)], axis=0)                            # (T*B, 2D)
        xg = jnp.dot(x_cat, wih, preferred_element_type=jnp.float32) + b  # (T*B, 8H)

        h = jnp.zeros((B, H2), jnp.float32)
        c = jnp.zeros((B, H2), jnp.float32)
        h_fwd = [None] * T
        h_rev = [None] * T
        for t in range(T):                                          # static unroll (T=8)
            # Serial critical path: ONE bf16 h-matmul + ONE 256-lane tanh.
            gates = xg[t * B:(t + 1) * B] + jnp.dot(
                h.astype(jnp.bfloat16), whh,
                preferred_element_type=jnp.float32)                 # (B, 8H)
            tall = jnp.tanh(gates)                 # single EUP pass, all 4 gates
            ifo = 0.5 * tall[:, 0:H6] + 0.5        # sigmoid of i/f/o (pre-scaled cols)
            i = ifo[:, 0:H2]
            f = ifo[:, H2:H4]
            o = ifo[:, H4:H6]
            g = tall[:, H6:H8]                     # tanh gate (unscaled cols)
            c = f * c + i * g
            h = o * jnp.tanh(c)
            h_fwd[t] = h[:, 0:H]                   # forward hidden for time t
            h_rev[T - 1 - t] = h[:, H:H2]          # reverse hidden for time T-1-t
        # Per-timestep bidirectional output, matching torch concat order.
        return [jnp.concatenate([h_fwd[t], h_rev[t]], axis=-1) for t in range(T)]

    xs = [emb[t * B:(t + 1) * B] for t in range(T)]                 # T x (B, E)
    xs = bidir_layer(xs, wih0_ref[...], whh0, b0)                   # layer 0 -> T x (B, 2H)
    # inter-layer LSTM dropout (p=0.5): identity in eval mode.
    xs = bidir_layer(xs, wih1_ref[...], whh1, b1)                   # layer 1 -> T x (B, 2H)

    # output.permute(1, 0, 2) folded in: stack timesteps along axis 1 in-registers.
    x = jnp.stack(xs, axis=1)                                       # (B, T, 2H)

    # attention_net(x, query=x); dropout on the query is identity in eval mode.
    inv_sqrt_dk = 1.0 / math.sqrt(H2)
    scores = jnp.einsum('btd,bsd->bts', x * inv_sqrt_dk, x,
                        preferred_element_type=jnp.float32)         # (B, T, T)
    m = scores.max(axis=-1, keepdims=True)
    e = jnp.exp(scores - m)
    alpha = e * pl.reciprocal(e.sum(axis=-1, keepdims=True), approx=True)
    # context = sum_t sum_s alpha[b,t,s] * x[b,s,:]  ==  (alpha summed over t) . x
    w = alpha.sum(axis=1)                                           # (B, T)
    ctx = jnp.sum(w[:, :, None] * x, axis=1)                        # (B, 2H)

    # fc: (B, 2H) @ (2H, 1) as elementwise mul + lane reduce (no 1-lane MXU pass).
    logit_ref[...] = (jnp.sum(ctx * wfc_ref[...], axis=-1, keepdims=True)
                      + bfc_ref[...])


def bilstm_attention_forward(params, tokens):
    """tokens: (T, B) int32 -> logits (B, 1)."""
    T, B = tokens.shape
    tok_flat = tokens.reshape(T * B, 1).astype(jnp.int32)           # row t*B+b <-> (t, b)

    def full(a):
        return pl.BlockSpec(a.shape, lambda *_: (0,) * a.ndim)

    args = (tok_flat, params['embedding'],
            params['wih0'], params['whh0'], params['b0'],
            params['wih1'], params['whh1'], params['b1'],
            params['fc_w_row'], params['fc_b'])

    return pl.pallas_call(
        functools.partial(_fused_bilstm_attn_kernel, T=T, B=B, H=HIDDEN, V=VOCAB),
        out_shape=jax.ShapeDtypeStruct((B, 1), jnp.float32),
        grid=(1,),
        in_specs=[full(a) for a in args],
        out_specs=pl.BlockSpec((B, 1), lambda *_: (0, 0)),
        compiler_params=pltpu.CompilerParams(dimension_semantics=("arbitrary",)),
    )(*args)


# ----------------------------------------------------------------------------
# Parameters: PyTorch-shaped raw weights + packing into the fused kernel layout.
# ----------------------------------------------------------------------------
def init_raw_params(key):
    keys = iter(jax.random.split(key, 24))
    raw = {'embedding': jax.random.normal(next(keys), (VOCAB, EMBED), jnp.float32)}
    bound = 1.0 / math.sqrt(HIDDEN)
    lstm = []
    for layer in range(N_LAYERS):
        in_dim = EMBED if layer == 0 else 2 * HIDDEN
        dirs = []
        for _direction in range(2):   # 0: forward, 1: reverse
            dirs.append({
                'w_ih': jax.random.uniform(next(keys), (4 * HIDDEN, in_dim), jnp.float32, -bound, bound),
                'w_hh': jax.random.uniform(next(keys), (4 * HIDDEN, HIDDEN), jnp.float32, -bound, bound),
                'b_ih': jax.random.uniform(next(keys), (4 * HIDDEN,), jnp.float32, -bound, bound),
                'b_hh': jax.random.uniform(next(keys), (4 * HIDDEN,), jnp.float32, -bound, bound),
            })
        lstm.append(dirs)
    raw['lstm'] = lstm
    fcb = 1.0 / math.sqrt(2 * HIDDEN)
    raw['fc_w'] = jax.random.uniform(next(keys), (1, 2 * HIDDEN), jnp.float32, -fcb, fcb)
    raw['fc_b'] = jax.random.uniform(next(keys), (1,), jnp.float32, -fcb, fcb)
    return raw


# PyTorch gate-row order is [i, f, g, o]; packed column order is [i, f, o, g]
# (sigmoid gates first).  i/f/o are scaled by 0.5 so that in-kernel
# sigmoid(z) = 0.5*(1 + tanh(0.5*z)) needs only the shared tanh.
_GATE_ORDER = ((0, 0.5), (1, 0.5), (3, 0.5), (2, 1.0))


def _pack_blockdiag(w_f, w_r, H, dtype):
    """PyTorch (4H, D) fwd/rev weights -> block-diagonal (2D, 8H) with columns
    [i_f i_r | f_f f_r | o_f o_r | g_f g_r], so [x_f | x_r] @ W gives both
    directions' gates in one matmul."""
    D = w_f.shape[1]
    out = jnp.zeros((2 * D, 8 * H), jnp.float32)
    for k, (src, scale) in enumerate(_GATE_ORDER):
        out = out.at[0:D, (2 * k) * H:(2 * k + 1) * H].set(
            scale * w_f[src * H:(src + 1) * H, :].T)
        out = out.at[D:2 * D, (2 * k + 1) * H:(2 * k + 2) * H].set(
            scale * w_r[src * H:(src + 1) * H, :].T)
    return out.astype(dtype)


def _pack_bias(d_f, d_r, H):
    bf = d_f['b_ih'] + d_f['b_hh']
    br = d_r['b_ih'] + d_r['b_hh']
    parts = []
    for src, scale in _GATE_ORDER:
        parts.append(scale * bf[src * H:(src + 1) * H])
        parts.append(scale * br[src * H:(src + 1) * H])
    return jnp.concatenate(parts)[None, :].astype(jnp.float32)       # (1, 8H)


def pack_params(raw):
    H = HIDDEN
    p = {'embedding': raw['embedding'].astype(jnp.float32)}
    for layer in range(N_LAYERS):
        d_f, d_r = raw['lstm'][layer]
        # wih: used once (hoisted, off critical path) -> keep f32 for accuracy.
        p[f'wih{layer}'] = _pack_blockdiag(d_f['w_ih'], d_r['w_ih'], H, jnp.float32)   # (2D, 8H)
        # whh: on the serial per-step path -> bf16 operands (f32 accumulate in-kernel).
        p[f'whh{layer}'] = _pack_blockdiag(d_f['w_hh'], d_r['w_hh'], H, jnp.bfloat16)  # (2H, 8H)
        p[f'b{layer}'] = _pack_bias(d_f, d_r, H)                                       # (1, 8H)
    p['fc_w_row'] = raw['fc_w'].astype(jnp.float32)      # (1, 2H)
    p['fc_b'] = raw['fc_b'][None, :].astype(jnp.float32) # (1, 1)
    return p


# ----------------------------------------------------------------------------
# Pure-JAX reference of the PyTorch module (for a numerical self-check).
# ----------------------------------------------------------------------------
def reference_forward(raw, tokens):
    emb = jnp.take(raw['embedding'], tokens, axis=0)     # (T, B, E)

    def run_direction(x, d, reverse):
        Wih, Whh = d['w_ih'], d['w_hh']
        b = d['b_ih'] + d['b_hh']
        B, H = x.shape[1], Whh.shape[1]

        def step(carry, xt):
            h, c = carry
            gates = xt @ Wih.T + h @ Whh.T + b
            i, f, g, o = jnp.split(gates, 4, axis=-1)
            c = jax.nn.sigmoid(f) * c + jax.nn.sigmoid(i) * jnp.tanh(g)
            h = jax.nn.sigmoid(o) * jnp.tanh(c)
            return (h, c), h

        xseq = x[::-1] if reverse else x
        _, hs = jax.lax.scan(step, (jnp.zeros((B, H)), jnp.zeros((B, H))), xseq)
        return hs[::-1] if reverse else hs

    layer_in = emb
    for layer in range(N_LAYERS):
        fwd = run_direction(layer_in, raw['lstm'][layer][0], reverse=False)
        rev = run_direction(layer_in, raw['lstm'][layer][1], reverse=True)
        layer_in = jnp.concatenate([fwd, rev], axis=-1)

    out = jnp.transpose(layer_in, (1, 0, 2))             # (B, T, 2H)
    d_k = out.shape[-1]
    scores = jnp.einsum('btd,bsd->bts', out, out) / math.sqrt(d_k)
    alpha = jax.nn.softmax(scores, axis=-1)
    ctx = jnp.einsum('bts,bsd->btd', alpha, out).sum(axis=1)
    return ctx @ raw['fc_w'].T + raw['fc_b'][None, :]


if __name__ == "__main__":
    key = jax.random.PRNGKey(0)
    pkey, xkey = jax.random.split(key)
    raw = init_raw_params(pkey)
    params = pack_params(raw)
    tokens = jax.random.randint(xkey, (SEQ, BATCH), 0, VOCAB, dtype=jnp.int32)

    logit = jax.jit(bilstm_attention_forward)(params, tokens)
    jax.block_until_ready(logit)
    assert logit.shape == (BATCH, 1)
    assert bool(jnp.all(jnp.isfinite(logit)))

    # Numerical self-check against the pure-JAX/XLA f32 reference of the module.
    # Tolerance deliberately widened from the all-f32 level because the kernel
    # adopts bf16 operands on the recurrent matmul, the tanh-form sigmoid and an
    # approx-reciprocal softmax (all per the performance review).
    ref = jax.jit(reference_forward)(raw, tokens)
    jax.block_until_ready(ref)
    max_err = float(jnp.max(jnp.abs(logit - ref)))
    assert max_err < 5e-2, f"Pallas kernel mismatch vs reference: max_err={max_err}"

    print("KERNEL_OK")
</pallas_src>

<mosaic_0001>
module attributes {stable_mosaic.version = 11 : i64} {
  func.func @_fused_bilstm_attn_kernel(%arg0: i32, %arg1: memref<32x1xi32, #tpu.memory_space<vmem>>, %arg2: memref<100x32xf32, #tpu.memory_space<vmem>>, %arg3: memref<64x256xf32, #tpu.memory_space<vmem>>, %arg4: memref<64x256xbf16, #tpu.memory_space<vmem>>, %arg5: memref<1x256xf32, #tpu.memory_space<vmem>>, %arg6: memref<128x256xf32, #tpu.memory_space<vmem>>, %arg7: memref<64x256xbf16, #tpu.memory_space<vmem>>, %arg8: memref<1x256xf32, #tpu.memory_space<vmem>>, %arg9: memref<1x64xf32, #tpu.memory_space<vmem>>, %arg10: memref<1x1xf32, #tpu.memory_space<vmem>>, %arg11: memref<4x1xf32, #tpu.memory_space<vmem>>) attributes {dimension_semantics = [#tpu.dimension_semantics<arbitrary>], iteration_bounds = array<i64: 1>, scalar_prefetch = 0 : i64, scratch_operands = 0 : i64, tpu.core_type = #tpu.core_type<tc>, window_params = [{pipeline_mode = #tpu.pipeline_mode<synchronous>, transform_indices = @transform_0, window_bounds = array<i64: 32, 1>}, {pipeline_mode = #tpu.pipeline_mode<synchronous>, transform_indices = @transform_1, window_bounds = array<i64: 100, 32>}, {pipeline_mode = #tpu.pipeline_mode<synchronous>, transform_indices = @transform_2, window_bounds = array<i64: 64, 256>}, {pipeline_mode = #tpu.pipeline_mode<synchronous>, transform_indices = @transform_3, window_bounds = array<i64: 64, 256>}, {pipeline_mode = #tpu.pipeline_mode<synchronous>, transform_indices = @transform_4, window_bounds = array<i64: 1, 256>}, {pipeline_mode = #tpu.pipeline_mode<synchronous>, transform_indices = @transform_5, window_bounds = array<i64: 128, 256>}, {pipeline_mode = #tpu.pipeline_mode<synchronous>, transform_indices = @transform_6, window_bounds = array<i64: 64, 256>}, {pipeline_mode = #tpu.pipeline_mode<synchronous>, transform_indices = @transform_7, window_bounds = array<i64: 1, 256>}, {pipeline_mode = #tpu.pipeline_mode<synchronous>, transform_indices = @transform_8, window_bounds = array<i64: 1, 64>}, {pipeline_mode = #tpu.pipeline_mode<synchronous>, transform_indices = @transform_9, window_bounds = array<i64: 1, 1>}, {pipeline_mode = #tpu.pipeline_mode<synchronous>, transform_indices = @transform_10, window_bounds = array<i64: 4, 1>}]} {
    %c0 = arith.constant 0 : index
    %c0_0 = arith.constant 0 : index
    %0 = vector.load %arg1[%c0, %c0_0] : memref<32x1xi32, #tpu.memory_space<vmem>>, vector<32x1xi32>
    %1 = tpu.iota {dimensions = array<i32: 1>} : vector<32x100xi32>
    %2 = vector.broadcast %0 : vector<32x1xi32> to vector<32x100xi32>
    %3 = arith.cmpi eq, %1, %2 : vector<32x100xi32>
    %cst = arith.constant 1.000000e+00 : f32
    %cst_1 = arith.constant 0.000000e+00 : f32
    %4 = vector.broadcast %cst : f32 to vector<32x100xf32>
    %5 = vector.broadcast %cst_1 : f32 to vector<32x100xf32>
    %6 = arith.select %3, %4, %5 : vector<32x100xi1>, vector<32x100xf32>
    %c0_2 = arith.constant 0 : index
    %c0_3 = arith.constant 0 : index
    %7 = vector.load %arg2[%c0_2, %c0_3] : memref<100x32xf32, #tpu.memory_space<vmem>>, vector<100x32xf32>
    %cst_4 = arith.constant dense<0.000000e+00> : vector<32x32xf32>
    %8 = tpu.matmul %6, %7, %cst_4 {dimension_numbers = #tpu.dot_dimension_numbers<[1], [0], [0], [1], [0, 0, 1, 1], [], []>} : vector<32x100xf32>, vector<100x32xf32>, vector<32x32xf32> -> vector<32x32xf32>
    %c0_5 = arith.constant 0 : index
    %c0_6 = arith.constant 0 : index
    %9 = vector.load %arg4[%c0_5, %c0_6] : memref<64x256xbf16, #tpu.memory_space<vmem>>, vector<64x256xbf16>
    %c0_7 = arith.constant 0 : index
    %c0_8 = arith.constant 0 : index
    %10 = vector.load %arg7[%c0_7, %c0_8] : memref<64x256xbf16, #tpu.memory_space<vmem>>, vector<64x256xbf16>
    %c0_9 = arith.constant 0 : index
    %c0_10 = arith.constant 0 : index
    %11 = vector.load %arg5[%c0_9, %c0_10] : memref<1x256xf32, #tpu.memory_space<vmem>>, vector<1x256xf32>
    %c0_11 = arith.constant 0 : index
    %c0_12 = arith.constant 0 : index
    %12 = vector.load %arg8[%c0_11, %c0_12] : memref<1x256xf32, #tpu.memory_space<vmem>>, vector<1x256xf32>
    %13 = vector.extract_strided_slice %8 {offsets = [0, 0], sizes = [4, 32], strides = [1, 1]} : vector<32x32xf32> to vector<4x32xf32>
    %14 = vector.extract_strided_slice %8 {offsets = [4, 0], sizes = [4, 32], strides = [1, 1]} : vector<32x32xf32> to vector<4x32xf32>
    %15 = vector.extract_strided_slice %8 {offsets = [8, 0], sizes = [4, 32], strides = [1, 1]} : vector<32x32xf32> to vector<4x32xf32>
    %16 = vector.extract_strided_slice %8 {offsets = [12, 0], sizes = [4, 32], strides = [1, 1]} : vector<32x32xf32> to vector<4x32xf32>
    %17 = vector.extract_strided_slice %8 {offsets = [16, 0], sizes = [4, 32], strides = [1, 1]} : vector<32x32xf32> to vector<4x32xf32>
    %18 = vector.extract_strided_slice %8 {offsets = [20, 0], sizes = [4, 32], strides = [1, 1]} : vector<32x32xf32> to vector<4x32xf32>
    %19 = vector.extract_strided_slice %8 {offsets = [24, 0], sizes = [4, 32], strides = [1, 1]} : vector<32x32xf32> to vector<4x32xf32>
    %20 = vector.extract_strided_slice %8 {offsets = [28, 0], sizes = [4, 32], strides = [1, 1]} : vector<32x32xf32> to vector<4x32xf32>
    %c0_13 = arith.constant 0 : index
    %c0_14 = arith.constant 0 : index
    %21 = vector.load %arg3[%c0_13, %c0_14] : memref<64x256xf32, #tpu.memory_space<vmem>>, vector<64x256xf32>
    %22 = tpu.concatenate %13, %20 in 1 : vector<4x32xf32>, vector<4x32xf32> -> vector<4x64xf32>
    %23 = tpu.concatenate %14, %19 in 1 : vector<4x32xf32>, vector<4x32xf32> -> vector<4x64xf32>
    %24 = tpu.concatenate %15, %18 in 1 : vector<4x32xf32>, vector<4x32xf32> -> vector<4x64xf32>
    %25 = tpu.concatenate %16, %17 in 1 : vector<4x32xf32>, vector<4x32xf32> -> vector<4x64xf32>
    %26 = tpu.concatenate %17, %16 in 1 : vector<4x32xf32>, vector<4x32xf32> -> vector<4x64xf32>
    %27 = tpu.concatenate %18, %15 in 1 : vector<4x32xf32>, vector<4x32xf32> -> vector<4x64xf32>
    %28 = tpu.concatenate %19, %14 in 1 : vector<4x32xf32>, vector<4x32xf32> -> vector<4x64xf32>
    %29 = tpu.concatenate %20, %13 in 1 : vector<4x32xf32>, vector<4x32xf32> -> vector<4x64xf32>
    %30 = tpu.concatenate %22, %23, %24, %25, %26, %27, %28, %29 in 0 : vector<4x64xf32>, vector<4x64xf32>, vector<4x64xf32>, vector<4x64xf32>, vector<4x64xf32>, vector<4x64xf32>, vector<4x64xf32>, vector<4x64xf32> -> vector<32x64xf32>
    %cst_15 = arith.constant dense<0.000000e+00> : vector<32x256xf32>
    %31 = tpu.matmul %30, %21, %cst_15 {dimension_numbers = #tpu.dot_dimension_numbers<[1], [0], [0], [1], [0, 0, 1, 1], [], []>} : vector<32x64xf32>, vector<64x256xf32>, vector<32x256xf32> -> vector<32x256xf32>
    %32 = vector.broadcast %11 : vector<1x256xf32> to vector<32x256xf32>
    %33 = arith.addf %31, %32 : vector<32x256xf32>
    %cst_16 = arith.constant 0.000000e+00 : f32
    %34 = vector.broadcast %cst_16 : f32 to vector<4x64xf32>
    %cst_17 = arith.constant 0.000000e+00 : f32
    %35 = vector.broadcast %cst_17 : f32 to vector<4x64xf32>
    %36 = vector.extract_strided_slice %33 {offsets = [0, 0], sizes = [4, 256], strides = [1, 1]} : vector<32x256xf32> to vector<4x256xf32>
    %37 = arith.truncf %34 : vector<4x64xf32> to vector<4x64xbf16>
    %cst_18 = arith.constant dense<0.000000e+00> : vector<4x256xf32>
    %38 = tpu.matmul %37, %9, %cst_18 {dimension_numbers = #tpu.dot_dimension_numbers<[1], [0], [0], [1], [0, 0, 1, 1], [], []>} : vector<4x64xbf16>, vector<64x256xbf16>, vector<4x256xf32> -> vector<4x256xf32>
    %39 = arith.addf %36, %38 : vector<4x256xf32>
    %40 = math.tanh %39 : vector<4x256xf32>
    %41 = vector.extract_strided_slice %40 {offsets = [0, 0], sizes = [4, 192], strides = [1, 1]} : vector<4x256xf32> to vector<4x192xf32>
    %cst_19 = arith.constant 5.000000e-01 : f32
    %42 = vector.broadcast %cst_19 : f32 to vector<4x192xf32>
    %43 = arith.mulf %42, %41 : vector<4x192xf32>
    %cst_20 = arith.constant 5.000000e-01 : f32
    %44 = vector.broadcast %cst_20 : f32 to vector<4x192xf32>
    %45 = arith.addf %43, %44 : vector<4x192xf32>
    %46 = vector.extract_strided_slice %45 {offsets = [0, 0], sizes = [4, 64], strides = [1, 1]} : vector<4x192xf32> to vector<4x64xf32>
    %47 = vector.extract_strided_slice %45 {offsets = [0, 64], sizes = [4, 64], strides = [1, 1]} : vector<4x192xf32> to vector<4x64xf32>
    %48 = vector.extract_strided_slice %45 {offsets = [0, 128], sizes = [4, 64], strides = [1, 1]} : vector<4x192xf32> to vector<4x64xf32>
    %49 = vector.extract_strided_slice %40 {offsets = [0, 192], sizes = [4, 64], strides = [1, 1]} : vector<4x256xf32> to vector<4x64xf32>
    %50 = arith.mulf %47, %35 : vector<4x64xf32>
    %51 = arith.mulf %46, %49 : vector<4x64xf32>
    %52 = arith.addf %50, %51 : vector<4x64xf32>
    %53 = math.tanh %52 : vector<4x64xf32>
    %54 = arith.mulf %48, %53 : vector<4x64xf32>
    %55 = vector.extract_strided_slice %54 {offsets = [0, 0], sizes = [4, 32], strides = [1, 1]} : vector<4x64xf32> to vector<4x32xf32>
    %56 = vector.extract_strided_slice %54 {offsets = [0, 32], sizes = [4, 32], strides = [1, 1]} : vector<4x64xf32> to vector<4x32xf32>
    %57 = vector.extract_strided_slice %33 {offsets = [4, 0], sizes = [4, 256], strides = [1, 1]} : vector<32x256xf32> to vector<4x256xf32>
    %58 = arith.truncf %54 : vector<4x64xf32> to vector<4x64xbf16>
    %cst_21 = arith.constant dense<0.000000e+00> : vector<4x256xf32>
    %59 = tpu.matmul %58, %9, %cst_21 {dimension_numbers = #tpu.dot_dimension_numbers<[1], [0], [0], [1], [0, 0, 1, 1], [], []>} : vector<4x64xbf16>, vector<64x256xbf16>, vector<4x256xf32> -> vector<4x256xf32>
    %60 = arith.addf %57, %59 : vector<4x256xf32>
    %61 = math.tanh %60 : vector<4x256xf32>
    %62 = vector.extract_strided_slice %61 {offsets = [0, 0], sizes = [4, 192], strides = [1, 1]} : vector<4x256xf32> to vector<4x192xf32>
    %cst_22 = arith.constant 5.000000e-01 : f32
    %63 = vector.broadcast %cst_22 : f32 to vector<4x192xf32>
    %64 = arith.mulf %63, %62 : vector<4x192xf32>
    %cst_23 = arith.constant 5.000000e-01 : f32
    %65 = vector.broadcast %cst_23 : f32 to vector<4x192xf32>
    %66 = arith.addf %64, %65 : vector<4x192xf32>
    %67 = vector.extract_strided_slice %66 {offsets = [0, 0], sizes = [4, 64], strides = [1, 1]} : vector<4x192xf32> to vector<4x64xf32>
    %68 = vector.extract_strided_slice %66 {offsets = [0, 64], sizes = [4, 64], strides = [1, 1]} : vector<4x192xf32> to vector<4x64xf32>
    %69 = vector.extract_strided_slice %66 {offsets = [0, 128], sizes = [4, 64], strides = [1, 1]} : vector<4x192xf32> to vector<4x64xf32>
    %70 = vector.extract_strided_slice %61 {offsets = [0, 192], sizes = [4, 64], strides = [1, 1]} : vector<4x256xf32> to vector<4x64xf32>
    %71 = arith.mulf %68, %52 : vector<4x64xf32>
    %72 = arith.mulf %67, %70 : vector<4x64xf32>
    %73 = arith.addf %71, %72 : vector<4x64xf32>
    %74 = math.tanh %73 : vector<4x64xf32>
    %75 = arith.mulf %69, %74 : vector<4x64xf32>
    %76 = vector.extract_strided_slice %75 {offsets = [0, 0], sizes = [4, 32], strides = [1, 1]} : vector<4x64xf32> to vector<4x32xf32>
    %77 = vector.extract_strided_slice %75 {offsets = [0, 32], sizes = [4, 32], strides = [1, 1]} : vector<4x64xf32> to vector<4x32xf32>
    %78 = vector.extract_strided_slice %33 {offsets = [8, 0], sizes = [4, 256], strides = [1, 1]} : vector<32x256xf32> to vector<4x256xf32>
    %79 = arith.truncf %75 : vector<4x64xf32> to vector<4x64xbf16>
    %cst_24 = arith.constant dense<0.000000e+00> : vector<4x256xf32>
    %80 = tpu.matmul %79, %9, %cst_24 {dimension_numbers = #tpu.dot_dimension_numbers<[1], [0], [0], [1], [0, 0, 1, 1], [], []>} : vector<4x64xbf16>, vector<64x256xbf16>, vector<4x256xf32> -> vector<4x256xf32>
    %81 = arith.addf %78, %80 : vector<4x256xf32>
    %82 = math.tanh %81 : vector<4x256xf32>
    %83 = vector.extract_strided_slice %82 {offsets = [0, 0], sizes = [4, 192], strides = [1, 1]} : vector<4x256xf32> to vector<4x192xf32>
    %cst_25 = arith.constant 5.000000e-01 : f32
    %84 = vector.broadcast %cst_25 : f32 to vector<4x192xf32>
    %85 = arith.mulf %84, %83 : vector<4x192xf32>
    %cst_26 = arith.constant 5.000000e-01 : f32
    %86 = vector.broadcast %cst_26 : f32 to vector<4x192xf32>
    %87 = arith.addf %85, %86 : vector<4x192xf32>
    %88 = vector.extract_strided_slice %87 {offsets = [0, 0], sizes = [4, 64], strides = [1, 1]} : vector<4x192xf32> to vector<4x64xf32>
    %89 = vector.extract_strided_slice %87 {offsets = [0, 64], sizes = [4, 64], strides = [1, 1]} : vector<4x192xf32> to vector<4x64xf32>
    %90 = vector.extract_strided_slice %87 {offsets = [0, 128], sizes = [4, 64], strides = [1, 1]} : vector<4x192xf32> to vector<4x64xf32>
    %91 = vector.extract_strided_slice %82 {offsets = [0, 192], sizes = [4, 64], strides = [1, 1]} : vector<4x256xf32> to vector<4x64xf32>
    %92 = arith.mulf %89, %73 : vector<4x64xf32>
    %93 = arith.mulf %88, %91 : vector<4x64xf32>
    %94 = arith.addf %92, %93 : vector<4x64xf32>
    %95 = math.tanh %94 : vector<4x64xf32>
    %96 = arith.mulf %90, %95 : vector<4x64xf32>
    %97 = vector.extract_strided_slice %96 {offsets = [0, 0], sizes = [4, 32], strides = [1, 1]} : vector<4x64xf32> to vector<4x32xf32>
    %98 = vector.extract_strided_slice %96 {offsets = [0, 32], sizes = [4, 32], strides = [1, 1]} : vector<4x64xf32> to vector<4x32xf32>
    %99 = vector.extract_strided_slice %33 {offsets = [12, 0], sizes = [4, 256], strides = [1, 1]} : vector<32x256xf32> to vector<4x256xf32>
    %100 = arith.truncf %96 : vector<4x64xf32> to vector<4x64xbf16>
    %cst_27 = arith.constant dense<0.000000e+00> : vector<4x256xf32>
    %101 = tpu.matmul %100, %9, %cst_27 {dimension_numbers = #tpu.dot_dimension_numbers<[1], [0], [0], [1], [0, 0, 1, 1], [], []>} : vector<4x64xbf16>, vector<64x256xbf16>, vector<4x256xf32> -> vector<4x256xf32>
    %102 = arith.addf %99, %101 : vector<4x256xf32>
    %103 = math.tanh %102 : vector<4x256xf32>
    %104 = vector.extract_strided_slice %103 {offsets = [0, 0], sizes = [4, 192], strides = [1, 1]} : vector<4x256xf32> to vector<4x192xf32>
    %cst_28 = arith.constant 5.000000e-01 : f32
    %105 = vector.broadcast %cst_28 : f32 to vector<4x192xf32>
    %106 = arith.mulf %105, %104 : vector<4x192xf32>
    %cst_29 = arith.constant 5.000000e-01 : f32
    %107 = vector.broadcast %cst_29 : f32 to vector<4x192xf32>
    %108 = arith.addf %106, %107 : vector<4x192xf32>
    %109 = vector.extract_strided_slice %108 {offsets = [0, 0], sizes = [4, 64], strides = [1, 1]} : vector<4x192xf32> to vector<4x64xf32>
    %110 = vector.extract_strided_slice %108 {offsets = [0, 64], sizes = [4, 64], strides = [1, 1]} : vector<4x192xf32> to vector<4x64xf32>
    %111 = vector.extract_strided_slice %108 {offsets = [0, 128], sizes = [4, 64], strides = [1, 1]} : vector<4x192xf32> to vector<4x64xf32>
    %112 = vector.extract_strided_slice %103 {offsets = [0, 192], sizes = [4, 64], strides = [1, 1]} : vector<4x256xf32> to vector<4x64xf32>
    %113 = arith.mulf %110, %94 : vector<4x64xf32>
    %114 = arith.mulf %109, %112 : vector<4x64xf32>
    %115 = arith.addf %113, %114 : vector<4x64xf32>
    %116 = math.tanh %115 : vector<4x64xf32>
    %117 = arith.mulf %111, %116 : vector<4x64xf32>
    %118 = vector.extract_strided_slice %117 {offsets = [0, 0], sizes = [4, 32], strides = [1, 1]} : vector<4x64xf32> to vector<4x32xf32>
    %119 = vector.extract_strided_slice %117 {offsets = [0, 32], sizes = [4, 32], strides = [1, 1]} : vector<4x64xf32> to vector<4x32xf32>
    %120 = vector.extract_strided_slice %33 {offsets = [16, 0], sizes = [4, 256], strides = [1, 1]} : vector<32x256xf32> to vector<4x256xf32>
    %121 = arith.truncf %117 : vector<4x64xf32> to vector<4x64xbf16>
    %cst_30 = arith.constant dense<0.000000e+00> : vector<4x256xf32>
    %122 = tpu.matmul %121, %9, %cst_30 {dimension_numbers = #tpu.dot_dimension_numbers<[1], [0], [0], [1], [0, 0, 1, 1], [], []>} : vector<4x64xbf16>, vector<64x256xbf16>, vector<4x256xf32> -> vector<4x256xf32>
    %123 = arith.addf %120, %122 : vector<4x256xf32>
    %124 = math.tanh %123 : vector<4x256xf32>
    %125 = vector.extract_strided_slice %124 {offsets = [0, 0], sizes = [4, 192], strides = [1, 1]} : vector<4x256xf32> to vector<4x192xf32>
    %cst_31 = arith.constant 5.000000e-01 : f32
    %126 = vector.broadcast %cst_31 : f32 to vector<4x192xf32>
    %127 = arith.mulf %126, %125 : vector<4x192xf32>
    %cst_32 = arith.constant 5.000000e-01 : f32
    %128 = vector.broadcast %cst_32 : f32 to vector<4x192xf32>
    %129 = arith.addf %127, %128 : vector<4x192xf32>
    %130 = vector.extract_strided_slice %129 {offsets = [0, 0], sizes = [4, 64], strides = [1, 1]} : vector<4x192xf32> to vector<4x64xf32>
    %131 = vector.extract_strided_slice %129 {offsets = [0, 64], sizes = [4, 64], strides = [1, 1]} : vector<4x192xf32> to vector<4x64xf32>
    %132 = vector.extract_strided_slice %129 {offsets = [0, 128], sizes = [4, 64], strides = [1, 1]} : vector<4x192xf32> to vector<4x64xf32>
    %133 = vector.extract_strided_slice %124 {offsets = [0, 192], sizes = [4, 64], strides = [1, 1]} : vector<4x256xf32> to vector<4x64xf32>
    %134 = arith.mulf %131, %115 : vector<4x64xf32>
    %135 = arith.mulf %130, %133 : vector<4x64xf32>
    %136 = arith.addf %134, %135 : vector<4x64xf32>
    %137 = math.tanh %136 : vector<4x64xf32>
    %138 = arith.mulf %132, %137 : vector<4x64xf32>
    %139 = vector.extract_strided_slice %138 {offsets = [0, 0], sizes = [4, 32], strides = [1, 1]} : vector<4x64xf32> to vector<4x32xf32>
    %140 = vector.extract_strided_slice %138 {offsets = [0, 32], sizes = [4, 32], strides = [1, 1]} : vector<4x64xf32> to vector<4x32xf32>
    %141 = vector.extract_strided_slice %33 {offsets = [20, 0], sizes = [4, 256], strides = [1, 1]} : vector<32x256xf32> to vector<4x256xf32>
    %142 = arith.truncf %138 : vector<4x64xf32> to vector<4x64xbf16>
    %cst_33 = arith.constant dense<0.000000e+00> : vector<4x256xf32>
    %143 = tpu.matmul %142, %9, %cst_33 {dimension_numbers = #tpu.dot_dimension_numbers<[1], [0], [0], [1], [0, 0, 1, 1], [], []>} : vector<4x64xbf16>, vector<64x256xbf16>, vector<4x256xf32> -> vector<4x256xf32>
    %144 = arith.addf %141, %143 : vector<4x256xf32>
    %145 = math.tanh %144 : vector<4x256xf32>
    %146 = vector.extract_strided_slice %145 {offsets = [0, 0], sizes = [4, 192], strides = [1, 1]} : vector<4x256xf32> to vector<4x192xf32>
    %cst_34 = arith.constant 5.000000e-01 : f32
    %147 = vector.broadcast %cst_34 : f32 to vector<4x192xf32>
    %148 = arith.mulf %147, %146 : vector<4x192xf32>
    %cst_35 = arith.constant 5.000000e-01 : f32
    %149 = vector.broadcast %cst_35 : f32 to vector<4x192xf32>
    %150 = arith.addf %148, %149 : vector<4x192xf32>
    %151 = vector.extract_strided_slice %150 {offsets = [0, 0], sizes = [4, 64], strides = [1, 1]} : vector<4x192xf32> to vector<4x64xf32>
    %152 = vector.extract_strided_slice %150 {offsets = [0, 64], sizes = [4, 64], strides = [1, 1]} : vector<4x192xf32> to vector<4x64xf32>
    %153 = vector.extract_strided_slice %150 {offsets = [0, 128], sizes = [4, 64], strides = [1, 1]} : vector<4x192xf32> to vector<4x64xf32>
    %154 = vector.extract_strided_slice %145 {offsets = [0, 192], sizes = [4, 64], strides = [1, 1]} : vector<4x256xf32> to vector<4x64xf32>
    %155 = arith.mulf %152, %136 : vector<4x64xf32>
    %156 = arith.mulf %151, %154 : vector<4x64xf32>
    %157 = arith.addf %155, %156 : vector<4x64xf32>
    %158 = math.tanh %157 : vector<4x64xf32>
    %159 = arith.mulf %153, %158 : vector<4x64xf32>
    %160 = vector.extract_strided_slice %159 {offsets = [0, 0], sizes = [4, 32], strides = [1, 1]} : vector<4x64xf32> to vector<4x32xf32>
    %161 = vector.extract_strided_slice %159 {offsets = [0, 32], sizes = [4, 32], strides = [1, 1]} : vector<4x64xf32> to vector<4x32xf32>
    %162 = vector.extract_strided_slice %33 {offsets = [24, 0], sizes = [4, 256], strides = [1, 1]} : vector<32x256xf32> to vector<4x256xf32>
    %163 = arith.truncf %159 : vector<4x64xf32> to vector<4x64xbf16>
    %cst_36 = arith.constant dense<0.000000e+00> : vector<4x256xf32>
    %164 = tpu.matmul %163, %9, %cst_36 {dimension_numbers = #tpu.dot_dimension_numbers<[1], [0], [0], [1], [0, 0, 1, 1], [], []>} : vector<4x64xbf16>, vector<64x256xbf16>, vector<4x256xf32> -> vector<4x256xf32>
    %165 = arith.addf %162, %164 : vector<4x256xf32>
    %166 = math.tanh %165 : vector<4x256xf32>
    %167 = vector.extract_strided_slice %166 {offsets = [0, 0], sizes = [4, 192], strides = [1, 1]} : vector<4x256xf32> to vector<4x192xf32>
    %cst_37 = arith.constant 5.000000e-01 : f32
    %168 = vector.broadcast %cst_37 : f32 to vector<4x192xf32>
    %169 = arith.mulf %168, %167 : vector<4x192xf32>
    %cst_38 = arith.constant 5.000000e-01 : f32
    %170 = vector.broadcast %cst_38 : f32 to vector<4x192xf32>
    %171 = arith.addf %169, %170 : vector<4x192xf32>
    %172 = vector.extract_strided_slice %171 {offsets = [0, 0], sizes = [4, 64], strides = [1, 1]} : vector<4x192xf32> to vector<4x64xf32>
    %173 = vector.extract_strided_slice %171 {offsets = [0, 64], sizes = [4, 64], strides = [1, 1]} : vector<4x192xf32> to vector<4x64xf32>
    %174 = vector.extract_strided_slice %171 {offsets = [0, 128], sizes = [4, 64], strides = [1, 1]} : vector<4x192xf32> to vector<4x64xf32>
    %175 = vector.extract_strided_slice %166 {offsets = [0, 192], sizes = [4, 64], strides = [1, 1]} : vector<4x256xf32> to vector<4x64xf32>
    %176 = arith.mulf %173, %157 : vector<4x64xf32>
    %177 = arith.mulf %172, %175 : vector<4x64xf32>
    %178 = arith.addf %176, %177 : vector<4x64xf32>
    %179 = math.tanh %178 : vector<4x64xf32>
    %180 = arith.mulf %174, %179 : vector<4x64xf32>
    %181 = vector.extract_strided_slice %180 {offsets = [0, 0], sizes = [4, 32], strides = [1, 1]} : vector<4x64xf32> to vector<4x32xf32>
    %182 = vector.extract_strided_slice %180 {offsets = [0, 32], sizes = [4, 32], strides = [1, 1]} : vector<4x64xf32> to vector<4x32xf32>
    %183 = vector.extract_strided_slice %33 {offsets = [28, 0], sizes = [4, 256], strides = [1, 1]} : vector<32x256xf32> to vector<4x256xf32>
    %184 = arith.truncf %180 : vector<4x64xf32> to vector<4x64xbf16>
    %cst_39 = arith.constant dense<0.000000e+00> : vector<4x256xf32>
    %185 = tpu.matmul %184, %9, %cst_39 {dimension_numbers = #tpu.dot_dimension_numbers<[1], [0], [0], [1], [0, 0, 1, 1], [], []>} : vector<4x64xbf16>, vector<64x256xbf16>, vector<4x256xf32> -> vector<4x256xf32>
    %186 = arith.addf %183, %185 : vector<4x256xf32>
    %187 = math.tanh %186 : vector<4x256xf32>
    %188 = vector.extract_strided_slice %187 {offsets = [0, 0], sizes = [4, 192], strides = [1, 1]} : vector<4x256xf32> to vector<4x192xf32>
    %cst_40 = arith.constant 5.000000e-01 : f32
    %189 = vector.broadcast %cst_40 : f32 to vector<4x192xf32>
    %190 = arith.mulf %189, %188 : vector<4x192xf32>
    %cst_41 = arith.constant 5.000000e-01 : f32
    %191 = vector.broadcast %cst_41 : f32 to vector<4x192xf32>
    %192 = arith.addf %190, %191 : vector<4x192xf32>
    %193 = vector.extract_strided_slice %192 {offsets = [0, 0], sizes = [4, 64], strides = [1, 1]} : vector<4x192xf32> to vector<4x64xf32>
    %194 = vector.extract_strided_slice %192 {offsets = [0, 64], sizes = [4, 64], strides = [1, 1]} : vector<4x192xf32> to vector<4x64xf32>
    %195 = vector.extract_strided_slice %192 {offsets = [0, 128], sizes = [4, 64], strides = [1, 1]} : vector<4x192xf32> to vector<4x64xf32>
    %196 = vector.extract_strided_slice %187 {offsets = [0, 192], sizes = [4, 64], strides = [1, 1]} : vector<4x256xf32> to vector<4x64xf32>
    %197 = arith.mulf %194, %178 : vector<4x64xf32>
    %198 = arith.mulf %193, %196 : vector<4x64xf32>
    %199 = arith.addf %197, %198 : vector<4x64xf32>
    %200 = math.tanh %199 : vector<4x64xf32>
    %201 = arith.mulf %195, %200 : vector<4x64xf32>
    %202 = vector.extract_strided_slice %201 {offsets = [0, 0], sizes = [4, 32], strides = [1, 1]} : vector<4x64xf32> to vector<4x32xf32>
    %203 = vector.extract_strided_slice %201 {offsets = [0, 32], sizes = [4, 32], strides = [1, 1]} : vector<4x64xf32> to vector<4x32xf32>
    %204 = tpu.concatenate %55, %203 in 1 : vector<4x32xf32>, vector<4x32xf32> -> vector<4x64xf32>
    %205 = tpu.concatenate %76, %182 in 1 : vector<4x32xf32>, vector<4x32xf32> -> vector<4x64xf32>
    %206 = tpu.concatenate %97, %161 in 1 : vector<4x32xf32>, vector<4x32xf32> -> vector<4x64xf32>
    %207 = tpu.concatenate %118, %140 in 1 : vector<4x32xf32>, vector<4x32xf32> -> vector<4x64xf32>
    %208 = tpu.concatenate %139, %119 in 1 : vector<4x32xf32>, vector<4x32xf32> -> vector<4x64xf32>
    %209 = tpu.concatenate %160, %98 in 1 : vector<4x32xf32>, vector<4x32xf32> -> vector<4x64xf32>
    %210 = tpu.concatenate %181, %77 in 1 : vector<4x32xf32>, vector<4x32xf32> -> vector<4x64xf32>
    %211 = tpu.concatenate %202, %56 in 1 : vector<4x32xf32>, vector<4x32xf32> -> vector<4x64xf32>
    %c0_42 = arith.constant 0 : index
    %c0_43 = arith.constant 0 : index
    %212 = vector.load %arg6[%c0_42, %c0_43] : memref<128x256xf32, #tpu.memory_space<vmem>>, vector<128x256xf32>
    %213 = tpu.concatenate %204, %211 in 1 : vector<4x64xf32>, vector<4x64xf32> -> vector<4x128xf32>
    %214 = tpu.concatenate %205, %210 in 1 : vector<4x64xf32>, vector<4x64xf32> -> vector<4x128xf32>
    %215 = tpu.concatenate %206, %209 in 1 : vector<4x64xf32>, vector<4x64xf32> -> vector<4x128xf32>
    %216 = tpu.concatenate %207, %208 in 1 : vector<4x64xf32>, vector<4x64xf32> -> vector<4x128xf32>
    %217 = tpu.concatenate %208, %207 in 1 : vector<4x64xf32>, vector<4x64xf32> -> vector<4x128xf32>
    %218 = tpu.concatenate %209, %206 in 1 : vector<4x64xf32>, vector<4x64xf32> -> vector<4x128xf32>
    %219 = tpu.concatenate %210, %205 in 1 : vector<4x64xf32>, vector<4x64xf32> -> vector<4x128xf32>
    %220 = tpu.concatenate %211, %204 in 1 : vector<4x64xf32>, vector<4x64xf32> -> vector<4x128xf32>
    %221 = tpu.concatenate %213, %214, %215, %216, %217, %218, %219, %220 in 0 : vector<4x128xf32>, vector<4x128xf32>, vector<4x128xf32>, vector<4x128xf32>, vector<4x128xf32>, vector<4x128xf32>, vector<4x128xf32>, vector<4x128xf32> -> vector<32x128xf32>
    %cst_44 = arith.constant dense<0.000000e+00> : vector<32x256xf32>
    %222 = tpu.matmul %221, %212, %cst_44 {dimension_numbers = #tpu.dot_dimension_numbers<[1], [0], [0], [1], [0, 0, 1, 1], [], []>} : vector<32x128xf32>, vector<128x256xf32>, vector<32x256xf32> -> vector<32x256xf32>
    %223 = vector.broadcast %12 : vector<1x256xf32> to vector<32x256xf32>
    %224 = arith.addf %222, %223 : vector<32x256xf32>
    %cst_45 = arith.constant 0.000000e+00 : f32
    %225 = vector.broadcast %cst_45 : f32 to vector<4x64xf32>
    %cst_46 = arith.constant 0.000000e+00 : f32
    %226 = vector.broadcast %cst_46 : f32 to vector<4x64xf32>
    %227 = vector.extract_strided_slice %224 {offsets = [0, 0], sizes = [4, 256], strides = [1, 1]} : vector<32x256xf32> to vector<4x256xf32>
    %228 = arith.truncf %225 : vector<4x64xf32> to vector<4x64xbf16>
    %cst_47 = arith.constant dense<0.000000e+00> : vector<4x256xf32>
    %229 = tpu.matmul %228, %10, %cst_47 {dimension_numbers = #tpu.dot_dimension_numbers<[1], [0], [0], [1], [0, 0, 1, 1], [], []>} : vector<4x64xbf16>, vector<64x256xbf16>, vector<4x256xf32> -> vector<4x256xf32>
    %230 = arith.addf %227, %229 : vector<4x256xf32>
    %231 = math.tanh %230 : vector<4x256xf32>
    %232 = vector.extract_strided_slice %231 {offsets = [0, 0], sizes = [4, 192], strides = [1, 1]} : vector<4x256xf32> to vector<4x192xf32>
    %cst_48 = arith.constant 5.000000e-01 : f32
    %233 = vector.broadcast %cst_48 : f32 to vector<4x192xf32>
    %234 = arith.mulf %233, %232 : vector<4x192xf32>
    %cst_49 = arith.constant 5.000000e-01 : f32
    %235 = vector.broadcast %cst_49 : f32 to vector<4x192xf32>
    %236 = arith.addf %234, %235 : vector<4x192xf32>
    %237 = vector.extract_strided_slice %236 {offsets = [0, 0], sizes = [4, 64], strides = [1, 1]} : vector<4x192xf32> to vector<4x64xf32>
    %238 = vector.extract_strided_slice %236 {offsets = [0, 64], sizes = [4, 64], strides = [1, 1]} : vector<4x192xf32> to vector<4x64xf32>
    %239 = vector.extract_strided_slice %236 {offsets = [0, 128], sizes = [4, 64], strides = [1, 1]} : vector<4x192xf32> to vector<4x64xf32>
    %240 = vector.extract_strided_slice %231 {offsets = [0, 192], sizes = [4, 64], strides = [1, 1]} : vector<4x256xf32> to vector<4x64xf32>
    %241 = arith.mulf %238, %226 : vector<4x64xf32>
    %242 = arith.mulf %237, %240 : vector<4x64xf32>
    %243 = arith.addf %241, %242 : vector<4x64xf32>
    %244 = math.tanh %243 : vector<4x64xf32>
    %245 = arith.mulf %239, %244 : vector<4x64xf32>
    %246 = vector.extract_strided_slice %245 {offsets = [0, 0], sizes = [4, 32], strides = [1, 1]} : vector<4x64xf32> to vector<4x32xf32>
    %247 = vector.extract_strided_slice %245 {offsets = [0, 32], sizes = [4, 32], strides = [1, 1]} : vector<4x64xf32> to vector<4x32xf32>
    %248 = vector.extract_strided_slice %224 {offsets = [4, 0], sizes = [4, 256], strides = [1, 1]} : vector<32x256xf32> to vector<4x256xf32>
    %249 = arith.truncf %245 : vector<4x64xf32> to vector<4x64xbf16>
    %cst_50 = arith.constant dense<0.000000e+00> : vector<4x256xf32>
    %250 = tpu.matmul %249, %10, %cst_50 {dimension_numbers = #tpu.dot_dimension_numbers<[1], [0], [0], [1], [0, 0, 1, 1], [], []>} : vector<4x64xbf16>, vector<64x256xbf16>, vector<4x256xf32> -> vector<4x256xf32>
    %251 = arith.addf %248, %250 : vector<4x256xf32>
    %252 = math.tanh %251 : vector<4x256xf32>
    %253 = vector.extract_strided_slice %252 {offsets = [0, 0], sizes = [4, 192], strides = [1, 1]} : vector<4x256xf32> to vector<4x192xf32>
    %cst_51 = arith.constant 5.000000e-01 : f32
    %254 = vector.broadcast %cst_51 : f32 to vector<4x192xf32>
    %255 = arith.mulf %254, %253 : vector<4x192xf32>
    %cst_52 = arith.constant 5.000000e-01 : f32
    %256 = vector.broadcast %cst_52 : f32 to vector<4x192xf32>
    %257 = arith.addf %255, %256 : vector<4x192xf32>
    %258 = vector.extract_strided_slice %257 {offsets = [0, 0], sizes = [4, 64], strides = [1, 1]} : vector<4x192xf32> to vector<4x64xf32>
    %259 = vector.extract_strided_slice %257 {offsets = [0, 64], sizes = [4, 64], strides = [1, 1]} : vector<4x192xf32> to vector<4x64xf32>
    %260 = vector.extract_strided_slice %257 {offsets = [0, 128], sizes = [4, 64], strides = [1, 1]} : vector<4x192xf32> to vector<4x64xf32>
    %261 = vector.extract_strided_slice %252 {offsets = [0, 192], sizes = [4, 64], strides = [1, 1]} : vector<4x256xf32> to vector<4x64xf32>
    %262 = arith.mulf %259, %243 : vector<4x64xf32>
    %263 = arith.mulf %258, %261 : vector<4x64xf32>
    %264 = arith.addf %262, %263 : vector<4x64xf32>
    %265 = math.tanh %264 : vector<4x64xf32>
    %266 = arith.mulf %260, %265 : vector<4x64xf32>
    %267 = vector.extract_strided_slice %266 {offsets = [0, 0], sizes = [4, 32], strides = [1, 1]} : vector<4x64xf32> to vector<4x32xf32>
    %268 = vector.extract_strided_slice %266 {offsets = [0, 32], sizes = [4, 32], strides = [1, 1]} : vector<4x64xf32> to vector<4x32xf32>
    %269 = vector.extract_strided_slice %224 {offsets = [8, 0], sizes = [4, 256], strides = [1, 1]} : vector<32x256xf32> to vector<4x256xf32>
    %270 = arith.truncf %266 : vector<4x64xf32> to vector<4x64xbf16>
    %cst_53 = arith.constant dense<0.000000e+00> : vector<4x256xf32>
    %271 = tpu.matmul %270, %10, %cst_53 {dimension_numbers = #tpu.dot_dimension_numbers<[1], [0], [0], [1], [0, 0, 1, 1], [], []>} : vector<4x64xbf16>, vector<64x256xbf16>, vector<4x256xf32> -> vector<4x256xf32>
    %272 = arith.addf %269, %271 : vector<4x256xf32>
    %273 = math.tanh %272 : vector<4x256xf32>
    %274 = vector.extract_strided_slice %273 {offsets = [0, 0], sizes = [4, 192], strides = [1, 1]} : vector<4x256xf32> to vector<4x192xf32>
    %cst_54 = arith.constant 5.000000e-01 : f32
    %275 = vector.broadcast %cst_54 : f32 to vector<4x192xf32>
    %276 = arith.mulf %275, %274 : vector<4x192xf32>
    %cst_55 = arith.constant 5.000000e-01 : f32
    %277 = vector.broadcast %cst_55 : f32 to vector<4x192xf32>
    %278 = arith.addf %276, %277 : vector<4x192xf32>
    %279 = vector.extract_strided_slice %278 {offsets = [0, 0], sizes = [4, 64], strides = [1, 1]} : vector<4x192xf32> to vector<4x64xf32>
    %280 = vector.extract_strided_slice %278 {offsets = [0, 64], sizes = [4, 64], strides = [1, 1]} : vector<4x192xf32> to vector<4x64xf32>
    %281 = vector.extract_strided_slice %278 {offsets = [0, 128], sizes = [4, 64], strides = [1, 1]} : vector<4x192xf32> to vector<4x64xf32>
    %282 = vector.extract_strided_slice %273 {offsets = [0, 192], sizes = [4, 64], strides = [1, 1]} : vector<4x256xf32> to vector<4x64xf32>
    %283 = arith.mulf %280, %264 : vector<4x64xf32>
    %284 = arith.mulf %279, %282 : vector<4x64xf32>
    %285 = arith.addf %283, %284 : vector<4x64xf32>
    %286 = math.tanh %285 : vector<4x64xf32>
    %287 = arith.mulf %281, %286 : vector<4x64xf32>
    %288 = vector.extract_strided_slice %287 {offsets = [0, 0], sizes = [4, 32], strides = [1, 1]} : vector<4x64xf32> to vector<4x32xf32>
    %289 = vector.extract_strided_slice %287 {offsets = [0, 32], sizes = [4, 32], strides = [1, 1]} : vector<4x64xf32> to vector<4x32xf32>
    %290 = vector.extract_strided_slice %224 {offsets = [12, 0], sizes = [4, 256], strides = [1, 1]} : vector<32x256xf32> to vector<4x256xf32>
    %291 = arith.truncf %287 : vector<4x64xf32> to vector<4x64xbf16>
    %cst_56 = arith.constant dense<0.000000e+00> : vector<4x256xf32>
    %292 = tpu.matmul %291, %10, %cst_56 {dimension_numbers = #tpu.dot_dimension_numbers<[1], [0], [0], [1], [0, 0, 1, 1], [], []>} : vector<4x64xbf16>, vector<64x256xbf16>, vector<4x256xf32> -> vector<4x256xf32>
    %293 = arith.addf %290, %292 : vector<4x256xf32>
    %294 = math.tanh %293 : vector<4x256xf32>
    %295 = vector.extract_strided_slice %294 {offsets = [0, 0], sizes = [4, 192], strides = [1, 1]} : vector<4x256xf32> to vector<4x192xf32>
    %cst_57 = arith.constant 5.000000e-01 : f32
    %296 = vector.broadcast %cst_57 : f32 to vector<4x192xf32>
    %297 = arith.mulf %296, %295 : vector<4x192xf32>
    %cst_58 = arith.constant 5.000000e-01 : f32
    %298 = vector.broadcast %cst_58 : f32 to vector<4x192xf32>
    %299 = arith.addf %297, %298 : vector<4x192xf32>
    %300 = vector.extract_strided_slice %299 {offsets = [0, 0], sizes = [4, 64], strides = [1, 1]} : vector<4x192xf32> to vector<4x64xf32>
    %301 = vector.extract_strided_slice %299 {offsets = [0, 64], sizes = [4, 64], strides = [1, 1]} : vector<4x192xf32> to vector<4x64xf32>
    %302 = vector.extract_strided_slice %299 {offsets = [0, 128], sizes = [4, 64], strides = [1, 1]} : vector<4x192xf32> to vector<4x64xf32>
    %303 = vector.extract_strided_slice %294 {offsets = [0, 192], sizes = [4, 64], strides = [1, 1]} : vector<4x256xf32> to vector<4x64xf32>
    %304 = arith.mulf %301, %285 : vector<4x64xf32>
    %305 = arith.mulf %300, %303 : vector<4x64xf32>
    %306 = arith.addf %304, %305 : vector<4x64xf32>
    %307 = math.tanh %306 : vector<4x64xf32>
    %308 = arith.mulf %302, %307 : vector<4x64xf32>
    %309 = vector.extract_strided_slice %308 {offsets = [0, 0], sizes = [4, 32], strides = [1, 1]} : vector<4x64xf32> to vector<4x32xf32>
    %310 = vector.extract_strided_slice %308 {offsets = [0, 32], sizes = [4, 32], strides = [1, 1]} : vector<4x64xf32> to vector<4x32xf32>
    %311 = vector.extract_strided_slice %224 {offsets = [16, 0], sizes = [4, 256], strides = [1, 1]} : vector<32x256xf32> to vector<4x256xf32>
    %312 = arith.truncf %308 : vector<4x64xf32> to vector<4x64xbf16>
    %cst_59 = arith.constant dense<0.000000e+00> : vector<4x256xf32>
    %313 = tpu.matmul %312, %10, %cst_59 {dimension_numbers = #tpu.dot_dimension_numbers<[1], [0], [0], [1], [0, 0, 1, 1], [], []>} : vector<4x64xbf16>, vector<64x256xbf16>, vector<4x256xf32> -> vector<4x256xf32>
    %314 = arith.addf %311, %313 : vector<4x256xf32>
    %315 = math.tanh %314 : vector<4x256xf32>
    %316 = vector.extract_strided_slice %315 {offsets = [0, 0], sizes = [4, 192], strides = [1, 1]} : vector<4x256xf32> to vector<4x192xf32>
    %cst_60 = arith.constant 5.000000e-01 : f32
    %317 = vector.broadcast %cst_60 : f32 to vector<4x192xf32>
    %318 = arith.mulf %317, %316 : vector<4x192xf32>
    %cst_61 = arith.constant 5.000000e-01 : f32
    %319 = vector.broadcast %cst_61 : f32 to vector<4x192xf32>
    %320 = arith.addf %318, %319 : vector<4x192xf32>
    %321 = vector.extract_strided_slice %320 {offsets = [0, 0], sizes = [4, 64], strides = [1, 1]} : vector<4x192xf32> to vector<4x64xf32>
    %322 = vector.extract_strided_slice %320 {offsets = [0, 64], sizes = [4, 64], strides = [1, 1]} : vector<4x192xf32> to vector<4x64xf32>
    %323 = vector.extract_strided_slice %320 {offsets = [0, 128], sizes = [4, 64], strides = [1, 1]} : vector<4x192xf32> to vector<4x64xf32>
    %324 = vector.extract_strided_slice %315 {offsets = [0, 192], sizes = [4, 64], strides = [1, 1]} : vector<4x256xf32> to vector<4x64xf32>
    %325 = arith.mulf %322, %306 : vector<4x64xf32>
    %326 = arith.mulf %321, %324 : vector<4x64xf32>
    %327 = arith.addf %325, %326 : vector<4x64xf32>
    %328 = math.tanh %327 : vector<4x64xf32>
    %329 = arith.mulf %323, %328 : vector<4x64xf32>
    %330 = vector.extract_strided_slice %329 {offsets = [0, 0], sizes = [4, 32], strides = [1, 1]} : vector<4x64xf32> to vector<4x32xf32>
    %331 = vector.extract_strided_slice %329 {offsets = [0, 32], sizes = [4, 32], strides = [1, 1]} : vector<4x64xf32> to vector<4x32xf32>
    %332 = vector.extract_strided_slice %224 {offsets = [20, 0], sizes = [4, 256], strides = [1, 1]} : vector<32x256xf32> to vector<4x256xf32>
    %333 = arith.truncf %329 : vector<4x64xf32> to vector<4x64xbf16>
    %cst_62 = arith.constant dense<0.000000e+00> : vector<4x256xf32>
    %334 = tpu.matmul %333, %10, %cst_62 {dimension_numbers = #tpu.dot_dimension_numbers<[1], [0], [0], [1], [0, 0, 1, 1], [], []>} : vector<4x64xbf16>, vector<64x256xbf16>, vector<4x256xf32> -> vector<4x256xf32>
    %335 = arith.addf %332, %334 : vector<4x256xf32>
    %336 = math.tanh %335 : vector<4x256xf32>
    %337 = vector.extract_strided_slice %336 {offsets = [0, 0], sizes = [4, 192], strides = [1, 1]} : vector<4x256xf32> to vector<4x192xf32>
    %cst_63 = arith.constant 5.000000e-01 : f32
    %338 = vector.broadcast %cst_63 : f32 to vector<4x192xf32>
    %339 = arith.mulf %338, %337 : vector<4x192xf32>
    %cst_64 = arith.constant 5.000000e-01 : f32
    %340 = vector.broadcast %cst_64 : f32 to vector<4x192xf32>
    %341 = arith.addf %339, %340 : vector<4x192xf32>
    %342 = vector.extract_strided_slice %341 {offsets = [0, 0], sizes = [4, 64], strides = [1, 1]} : vector<4x192xf32> to vector<4x64xf32>
    %343 = vector.extract_strided_slice %341 {offsets = [0, 64], sizes = [4, 64], strides = [1, 1]} : vector<4x192xf32> to vector<4x64xf32>
    %344 = vector.extract_strided_slice %341 {offsets = [0, 128], sizes = [4, 64], strides = [1, 1]} : vector<4x192xf32> to vector<4x64xf32>
    %345 = vector.extract_strided_slice %336 {offsets = [0, 192], sizes = [4, 64], strides = [1, 1]} : vector<4x256xf32> to vector<4x64xf32>
    %346 = arith.mulf %343, %327 : vector<4x64xf32>
    %347 = arith.mulf %342, %345 : vector<4x64xf32>
    %348 = arith.addf %346, %347 : vector<4x64xf32>
    %349 = math.tanh %348 : vector<4x64xf32>
    %350 = arith.mulf %344, %349 : vector<4x64xf32>
    %351 = vector.extract_strided_slice %350 {offsets = [0, 0], sizes = [4, 32], strides = [1, 1]} : vector<4x64xf32> to vector<4x32xf32>
    %352 = vector.extract_strided_slice %350 {offsets = [0, 32], sizes = [4, 32], strides = [1, 1]} : vector<4x64xf32> to vector<4x32xf32>
    %353 = vector.extract_strided_slice %224 {offsets = [24, 0], sizes = [4, 256], strides = [1, 1]} : vector<32x256xf32> to vector<4x256xf32>
    %354 = arith.truncf %350 : vector<4x64xf32> to vector<4x64xbf16>
    %cst_65 = arith.constant dense<0.000000e+00> : vector<4x256xf32>
    %355 = tpu.matmul %354, %10, %cst_65 {dimension_numbers = #tpu.dot_dimension_numbers<[1], [0], [0], [1], [0, 0, 1, 1], [], []>} : vector<4x64xbf16>, vector<64x256xbf16>, vector<4x256xf32> -> vector<4x256xf32>
    %356 = arith.addf %353, %355 : vector<4x256xf32>
    %357 = math.tanh %356 : vector<4x256xf32>
    %358 = vector.extract_strided_slice %357 {offsets = [0, 0], sizes = [4, 192], strides = [1, 1]} : vector<4x256xf32> to vector<4x192xf32>
    %cst_66 = arith.constant 5.000000e-01 : f32
    %359 = vector.broadcast %cst_66 : f32 to vector<4x192xf32>
    %360 = arith.mulf %359, %358 : vector<4x192xf32>
    %cst_67 = arith.constant 5.000000e-01 : f32
    %361 = vector.broadcast %cst_67 : f32 to vector<4x192xf32>
    %362 = arith.addf %360, %361 : vector<4x192xf32>
    %363 = vector.extract_strided_slice %362 {offsets = [0, 0], sizes = [4, 64], strides = [1, 1]} : vector<4x192xf32> to vector<4x64xf32>
    %364 = vector.extract_strided_slice %362 {offsets = [0, 64], sizes = [4, 64], strides = [1, 1]} : vector<4x192xf32> to vector<4x64xf32>
    %365 = vector.extract_strided_slice %362 {offsets = [0, 128], sizes = [4, 64], strides = [1, 1]} : vector<4x192xf32> to vector<4x64xf32>
    %366 = vector.extract_strided_slice %357 {offsets = [0, 192], sizes = [4, 64], strides = [1, 1]} : vector<4x256xf32> to vector<4x64xf32>
    %367 = arith.mulf %364, %348 : vector<4x64xf32>
    %368 = arith.mulf %363, %366 : vector<4x64xf32>
    %369 = arith.addf %367, %368 : vector<4x64xf32>
    %370 = math.tanh %369 : vector<4x64xf32>
    %371 = arith.mulf %365, %370 : vector<4x64xf32>
    %372 = vector.extract_strided_slice %371 {offsets = [0, 0], sizes = [4, 32], strides = [1, 1]} : vector<4x64xf32> to vector<4x32xf32>
    %373 = vector.extract_strided_slice %371 {offsets = [0, 32], sizes = [4, 32], strides = [1, 1]} : vector<4x64xf32> to vector<4x32xf32>
    %374 = vector.extract_strided_slice %224 {offsets = [28, 0], sizes = [4, 256], strides = [1, 1]} : vector<32x256xf32> to vector<4x256xf32>
    %375 = arith.truncf %371 : vector<4x64xf32> to vector<4x64xbf16>
    %cst_68 = arith.constant dense<0.000000e+00> : vector<4x256xf32>
    %376 = tpu.matmul %375, %10, %cst_68 {dimension_numbers = #tpu.dot_dimension_numbers<[1], [0], [0], [1], [0, 0, 1, 1], [], []>} : vector<4x64xbf16>, vector<64x256xbf16>, vector<4x256xf32> -> vector<4x256xf32>
    %377 = arith.addf %374, %376 : vector<4x256xf32>
    %378 = math.tanh %377 : vector<4x256xf32>
    %379 = vector.extract_strided_slice %378 {offsets = [0, 0], sizes = [4, 192], strides = [1, 1]} : vector<4x256xf32> to vector<4x192xf32>
    %cst_69 = arith.constant 5.000000e-01 : f32
    %380 = vector.broadcast %cst_69 : f32 to vector<4x192xf32>
    %381 = arith.mulf %380, %379 : vector<4x192xf32>
    %cst_70 = arith.constant 5.000000e-01 : f32
    %382 = vector.broadcast %cst_70 : f32 to vector<4x192xf32>
    %383 = arith.addf %381, %382 : vector<4x192xf32>
    %384 = vector.extract_strided_slice %383 {offsets = [0, 0], sizes = [4, 64], strides = [1, 1]} : vector<4x192xf32> to vector<4x64xf32>
    %385 = vector.extract_strided_slice %383 {offsets = [0, 64], sizes = [4, 64], strides = [1, 1]} : vector<4x192xf32> to vector<4x64xf32>
    %386 = vector.extract_strided_slice %383 {offsets = [0, 128], sizes = [4, 64], strides = [1, 1]} : vector<4x192xf32> to vector<4x64xf32>
    %387 = vector.extract_strided_slice %378 {offsets = [0, 192], sizes = [4, 64], strides = [1, 1]} : vector<4x256xf32> to vector<4x64xf32>
    %388 = arith.mulf %385, %369 : vector<4x64xf32>
    %389 = arith.mulf %384, %387 : vector<4x64xf32>
    %390 = arith.addf %388, %389 : vector<4x64xf32>
    %391 = math.tanh %390 : vector<4x64xf32>
    %392 = arith.mulf %386, %391 : vector<4x64xf32>
    %393 = vector.extract_strided_slice %392 {offsets = [0, 0], sizes = [4, 32], strides = [1, 1]} : vector<4x64xf32> to vector<4x32xf32>
    %394 = vector.extract_strided_slice %392 {offsets = [0, 32], sizes = [4, 32], strides = [1, 1]} : vector<4x64xf32> to vector<4x32xf32>
    %395 = tpu.concatenate %246, %394 in 1 : vector<4x32xf32>, vector<4x32xf32> -> vector<4x64xf32>
    %396 = tpu.concatenate %267, %373 in 1 : vector<4x32xf32>, vector<4x32xf32> -> vector<4x64xf32>
    %397 = tpu.concatenate %288, %352 in 1 : vector<4x32xf32>, vector<4x32xf32> -> vector<4x64xf32>
    %398 = tpu.concatenate %309, %331 in 1 : vector<4x32xf32>, vector<4x32xf32> -> vector<4x64xf32>
    %399 = tpu.concatenate %330, %310 in 1 : vector<4x32xf32>, vector<4x32xf32> -> vector<4x64xf32>
    %400 = tpu.concatenate %351, %289 in 1 : vector<4x32xf32>, vector<4x32xf32> -> vector<4x64xf32>
    %401 = tpu.concatenate %372, %268 in 1 : vector<4x32xf32>, vector<4x32xf32> -> vector<4x64xf32>
    %402 = tpu.concatenate %393, %247 in 1 : vector<4x32xf32>, vector<4x32xf32> -> vector<4x64xf32>
    %403 = vector.shape_cast %395 : vector<4x64xf32> to vector<4x1x64xf32>
    %404 = vector.shape_cast %396 : vector<4x64xf32> to vector<4x1x64xf32>
    %405 = vector.shape_cast %397 : vector<4x64xf32> to vector<4x1x64xf32>
    %406 = vector.shape_cast %398 : vector<4x64xf32> to vector<4x1x64xf32>
    %407 = vector.shape_cast %399 : vector<4x64xf32> to vector<4x1x64xf32>
    %408 = vector.shape_cast %400 : vector<4x64xf32> to vector<4x1x64xf32>
    %409 = vector.shape_cast %401 : vector<4x64xf32> to vector<4x1x64xf32>
    %410 = vector.shape_cast %402 : vector<4x64xf32> to vector<4x1x64xf32>
    %411 = tpu.concatenate %403, %404, %405, %406, %407, %408, %409, %410 in 1 : vector<4x1x64xf32>, vector<4x1x64xf32>, vector<4x1x64xf32>, vector<4x1x64xf32>, vector<4x1x64xf32>, vector<4x1x64xf32>, vector<4x1x64xf32>, vector<4x1x64xf32> -> vector<4x8x64xf32>
    %cst_71 = arith.constant 1.250000e-01 : f32
    %412 = vector.broadcast %cst_71 : f32 to vector<4x8x64xf32>
    %413 = arith.mulf %411, %412 : vector<4x8x64xf32>
    "tpu.trace_start"() <{level = 10 : i32, message = "btd,bsd->bts"}> : () -> ()
    %cst_72 = arith.constant dense<0.000000e+00> : vector<4x8x8xf32>
    %414 = tpu.matmul %413, %411, %cst_72 {dimension_numbers = #tpu.dot_dimension_numbers<[2], [2], [1], [1], [0, 0, 0, 1, 1, 1], [0], [0]>} : vector<4x8x64xf32>, vector<4x8x64xf32>, vector<4x8x8xf32> -> vector<4x8x8xf32>
    "tpu.trace_stop"() : () -> ()
    %cst_73 = arith.constant dense<0xFF800000> : vector<4x8xf32>
    %415 = vector.multi_reduction <maximumf>, %414, %cst_73 [2] : vector<4x8x8xf32> to vector<4x8xf32>
    %416 = vector.shape_cast %415 : vector<4x8xf32> to vector<4x8x1xf32>
    %417 = vector.broadcast %416 : vector<4x8x1xf32> to vector<4x8x8xf32>
    %418 = arith.subf %414, %417 : vector<4x8x8xf32>
    %419 = math.exp %418 : vector<4x8x8xf32>
    %cst_74 = arith.constant dense<0.000000e+00> : vector<4x8xf32>
    %420 = vector.multi_reduction <add>, %419, %cst_74 [2] : vector<4x8x8xf32> to vector<4x8xf32>
    %421 = vector.shape_cast %420 : vector<4x8xf32> to vector<4x8x1xf32>
    %422 = tpu.reciprocal %421 {approx = true} : vector<4x8x1xf32> -> vector<4x8x1xf32>
    %423 = vector.broadcast %422 : vector<4x8x1xf32> to vector<4x8x8xf32>
    %424 = arith.mulf %419, %423 : vector<4x8x8xf32>
    %cst_75 = arith.constant dense<0.000000e+00> : vector<4x8xf32>
    %425 = vector.multi_reduction <add>, %424, %cst_75 [1] : vector<4x8x8xf32> to vector<4x8xf32>
    %426 = vector.shape_cast %425 : vector<4x8xf32> to vector<4x8x1xf32>
    %427 = vector.broadcast %426 : vector<4x8x1xf32> to vector<4x8x64xf32>
    %428 = arith.mulf %427, %411 : vector<4x8x64xf32>
    %cst_76 = arith.constant dense<0.000000e+00> : vector<4x64xf32>
    %429 = vector.multi_reduction <add>, %428, %cst_76 [1] : vector<4x8x64xf32> to vector<4x64xf32>
    %c0_77 = arith.constant 0 : index
    %c0_78 = arith.constant 0 : index
    %430 = vector.load %arg9[%c0_77, %c0_78] : memref<1x64xf32, #tpu.memory_space<vmem>>, vector<1x64xf32>
    %431 = vector.broadcast %430 : vector<1x64xf32> to vector<4x64xf32>
    %432 = arith.mulf %429, %431 : vector<4x64xf32>
    %cst_79 = arith.constant dense<0.000000e+00> : vector<4xf32>
    %433 = vector.multi_reduction <add>, %432, %cst_79 [1] : vector<4x64xf32> to vector<4xf32>
    %434 = vector.shape_cast %433 : vector<4xf32> to vector<4x1xf32>
    %c0_80 = arith.constant 0 : index
    %c0_81 = arith.constant 0 : index
    %435 = vector.load %arg10[%c0_80, %c0_81] : memref<1x1xf32, #tpu.memory_space<vmem>>, vector<1x1xf32>
    %436 = vector.broadcast %435 : vector<1x1xf32> to vector<4x1xf32>
    %437 = arith.addf %434, %436 : vector<4x1xf32>
    %c0_82 = arith.constant 0 : index
    %c0_83 = arith.constant 0 : index
    %438 = vector.load %arg11[%c0_82, %c0_83] : memref<4x1xf32, #tpu.memory_space<vmem>>, vector<4x1xf32>
    tpu.vector_store %arg11[%c0_82, %c0_83], %437 {strides = array<i32>} : memref<4x1xf32, #tpu.memory_space<vmem>>, vector<4x1xf32>,
    return
  }
  func.func @transform_0(%arg0: i32) -> (i32, i32) {
    %c0_i32 = arith.constant 0 : i32
    %c0_i32_0 = arith.constant 0 : i32
    %c0_i32_1 = arith.constant 0 : i32
    return %c0_i32, %c0_i32_0 : i32, i32
  }
  func.func @transform_1(%arg0: i32) -> (i32, i32) {
    %c0_i32 = arith.constant 0 : i32
    %c0_i32_0 = arith.constant 0 : i32
    %c0_i32_1 = arith.constant 0 : i32
    return %c0_i32, %c0_i32_0 : i32, i32
  }
  func.func @transform_2(%arg0: i32) -> (i32, i32) {
    %c0_i32 = arith.constant 0 : i32
    %c0_i32_0 = arith.constant 0 : i32
    %c0_i32_1 = arith.constant 0 : i32
    return %c0_i32, %c0_i32_0 : i32, i32
  }
  func.func @transform_3(%arg0: i32) -> (i32, i32) {
    %c0_i32 = arith.constant 0 : i32
    %c0_i32_0 = arith.constant 0 : i32
    %c0_i32_1 = arith.constant 0 : i32
    return %c0_i32, %c0_i32_0 : i32, i32
  }
  func.func @transform_4(%arg0: i32) -> (i32, i32) {
    %c0_i32 = arith.constant 0 : i32
    %c0_i32_0 = arith.constant 0 : i32
    %c0_i32_1 = arith.constant 0 : i32
    return %c0_i32, %c0_i32_0 : i32, i32
  }
  func.func @transform_5(%arg0: i32) -> (i32, i32) {
    %c0_i32 = arith.constant 0 : i32
    %c0_i32_0 = arith.constant 0 : i32
    %c0_i32_1 = arith.constant 0 : i32
    return %c0_i32, %c0_i32_0 : i32, i32
  }
  func.func @transform_6(%arg0: i32) -> (i32, i32) {
    %c0_i32 = arith.constant 0 : i32
    %c0_i32_0 = arith.constant 0 : i32
    %c0_i32_1 = arith.constant 0 : i32
    return %c0_i32, %c0_i32_0 : i32, i32
  }
  func.func @transform_7(%arg0: i32) -> (i32, i32) {
    %c0_i32 = arith.constant 0 : i32
    %c0_i32_0 = arith.constant 0 : i32
    %c0_i32_1 = arith.constant 0 : i32
    return %c0_i32, %c0_i32_0 : i32, i32
  }
  func.func @transform_8(%arg0: i32) -> (i32, i32) {
    %c0_i32 = arith.constant 0 : i32
    %c0_i32_0 = arith.constant 0 : i32
    %c0_i32_1 = arith.constant 0 : i32
    return %c0_i32, %c0_i32_0 : i32, i32
  }
  func.func @transform_9(%arg0: i32) -> (i32, i32) {
    %c0_i32 = arith.constant 0 : i32
    %c0_i32_0 = arith.constant 0 : i32
    %c0_i32_1 = arith.constant 0 : i32
    return %c0_i32, %c0_i32_0 : i32, i32
  }
  func.func @transform_10(%arg0: i32) -> (i32, i32) {
    %c0_i32 = arith.constant 0 : i32
    %c0_i32_0 = arith.constant 0 : i32
    %c0_i32_1 = arith.constant 0 : i32
    return %c0_i32, %c0_i32_0 : i32, i32
  }
}

</mosaic_0001>

<bundles_post_ra>
// kernel: bilstm_attention_forward.1
= control target key start
LH: loop header
LB: loop body
LE: loop exit
PB: predicated region body
PF: predicated region fallthrough
CT: control target
= control target key end

     0   :  { %s4108_s0 = inlined_call_operand.vmem [shape: s32[32,1], index: 0, kind: input, shape index: {}]   ;;  %s4109_s1 = inlined_call_operand.vmem [shape: f32[100,32], index: 1, kind: input, shape index: {}]   ;;  %s4110_s2 = inlined_call_operand.vmem [shape: f32[64,256], index: 2, kind: input, shape index: {}]   ;;  %s4111_s3 = inlined_call_operand.vmem [shape: bf16[64,256], index: 3, kind: input, shape index: {}]   ;;  %s4112_s4 = inlined_call_operand.vmem [shape: f32[1,256], index: 4, kind: input, shape index: {}]   ;;  %s4113_s5 = inlined_call_operand.hbm [shape: f32[128,256], index: 5, kind: input, shape index: {}]   ;;  %s4114_s6 = inlined_call_operand.hbm [shape: bf16[64,256], index: 6, kind: input, shape index: {}]   ;;  %s4115_s7 = inlined_call_operand.vmem [shape: f32[1,256], index: 7, kind: input, shape index: {}]   ;;  %s4116_s8 = inlined_call_operand.vmem [shape: f32[1,64], index: 8, kind: input, shape index: {}]   ;;  %s4117_s9 = inlined_call_operand.<no memory space> [shape: f32[1,1], index: 9, kind: input, shape index: {}]   ;;  %s4118_s10 = inlined_call_operand.vmem [shape: f32[4,1], index: 10, kind: output, shape index: {}]  }
   0x1   :  { %v15_v0 = vstv %s4117_s9 }
   0x2   :  { %16 = vst [vmem:[#allocation2] sm:$0x1] %v15_v0 }
   0x3   :  { %17 = vsyncpa [#allocation4], 0 }
   0x4   :  { %18 = vsyncpa [#allocation6], 0  ;;  %s3196_s15 = smov [#allocation3]   ;;  %s3148_s19 = scalar_lea.hbm %s4113_s5, 4096 }
   0x5   :  { %s34_s16 = sshll.u32 %s3196_s15, 4  ;;  %p3149_p0 = scmp.ne.s32.totalorder %s4113_s5, %s3148_s19  ;;  %s35_s16 = int_to_ptr.vmem [resolvable:$true] %s34_s16 }
   0x6   :  { %p3152_p1 = scmp.lt.u32.totalorder %s3148_s19, %s4113_s5 }
   0x8   :  { %p3154_p2 = pnand %p3152_p1, %p3149_p0 }
   0xa   :  { %3157 = shalt.err (!%p3154_p2)
}
   0xb   :  { %s3158_s9 = scalar_lea.vmem %s35_s16, 4096  ;;  %p3163_p4 = scmp.lt.s32.totalorder %s35_s16, %s35_s16 }
   0xc   :  { %p3159_p3 = scmp.ne.s32.totalorder %s35_s16, %s3158_s9  ;;  %p3164_p5 = scmp.lt.s32.totalorder %s3158_s9, %s3158_s9 }
   0xe   :  { %p3165_p6 = por %p3164_p5, %p3163_p4 }
  0x10   :  { %p3166_p7 = pnand %p3165_p6, %p3159_p3 }
  0x12   :  { %3169 = shalt.err (!%p3166_p7)
}
  0x13   :  { %s3197_s24 = smov 256   ;;  %s3198_s25 = smov 16  }
  0x14   :  { %40 = dma.hbm_to_vmem [thread:$0]  %s4113_s5, 4096, %s35_s16, [#allocation4], %s3197_s24, %s3197_s24, %s3198_s25  }
  0x15   :  { %s3199_s28 = smov [#allocation5]   ;;  %s3170_s12 = scalar_lea.hbm %s4114_s6, 1024 }
  0x16   :  { %s46_s29 = sshll.u32 %s3199_s28, 4  ;;  %p3171_p8 = scmp.ne.s32.totalorder %s4114_s6, %s3170_s12  ;;  %s47_s29 = int_to_ptr.vmem [resolvable:$true] %s46_s29 }
  0x17   :  { %p3174_p9 = scmp.lt.u32.totalorder %s3170_s12, %s4114_s6 }
  0x19   :  { %p3176_p10 = pnand %p3174_p9, %p3171_p8 }
  0x1b   :  { %3179 = shalt.err (!%p3176_p10)
}
  0x1c   :  { %s3180_s18 = scalar_lea.vmem %s47_s29, 1024  ;;  %p3185_p12 = scmp.lt.s32.totalorder %s47_s29, %s47_s29 }
  0x1d   :  { %p3181_p11 = scmp.ne.s32.totalorder %s47_s29, %s3180_s18  ;;  %p3186_p13 = scmp.lt.s32.totalorder %s3180_s18, %s3180_s18 }
  0x1f   :  { %p3187_p0 = por %p3186_p13, %p3185_p12 }
  0x21   :  { %p3188_p1 = pnand %p3187_p0, %p3181_p11 }
  0x23   :  { %3191 = shalt.err (!%p3188_p1)
}
  0x24   :  { %s3200_s5 = smov 128   ;;  %s3201_s16 = smov 8  }
  0x25   :  { %52 = dma.hbm_to_vmem [thread:$0]  %s4114_s6, 1024, %s47_s29, [#allocation6], %s3200_s5, %s3200_s5, %s3201_s16  }
  0x26   :  { %3192 = dma.done.wait [#allocation4], 4096  }
  0x27   :  { %3193 = vsyncadd [#allocation4], 4294963200 }
  0x28   :  { %3194 = dma.done.wait [#allocation6], 1024  }
  0x29   :  { %3195 = vsyncadd [#allocation6], 4294966272  ;;  %v3202_v1 = vmov 0   ;;  %v3203_v2 = vmov 0.0   ;;  %v68_v3 = vld [vmem:[%s4108_s0 + $0x10] sm:$0xff]  ;;  %v66_v4 = vld [vmem:[%s4108_s0] sm:$0xff]  ;;  %v70_v26 = vlaneseq }
  0x2a   :  { %2991 = vset.pattern.permute.xlu1 %v3202_v1  ;;  %2990 = vset.pattern.permute.xlu0 %v3202_v1  ;;  %v69_v5 = vld [vmem:[%s4108_s0 + $0x18] sm:$0xff]  ;;  %v92_v6 = vld [vmem:[%s4109_s1] sm:$0xff]  ;;  %v93_v7 = vld [vmem:[%s4109_s1 + $0x8] sm:$0xff]  ;;  %vm118_vm0 = vcmask 1043456   ;;  %vm105_vm1 = vcmask 818176   ;;  %s3204_s26 = smov 32  }
  0x2b   :  { %358 = vmatprep.mubr.f32.mxu1 %v3203_v2  ;;  %79 = vperm.xlu1 %2991, %v68_v3   ;;  %v67_v8 = vld [vmem:[%s4108_s0 + $0x8] sm:$0xff]  ;;  %v2906_v9 = vpack.c.bf16 %v93_v7, %v92_v6  ;;  %v94_v10 = vld [vmem:[%s4109_s1 + $0x10] sm:$0xff]  ;;  %v95_v11 = vld [vmem:[%s4109_s1 + $0x18] sm:$0xff]  ;;  %v71_v27 = vand.u32 127, %v70_v26  ;;  %vm246_vm6 = vcmask 261120   ;;  %vm281_vm7 = vcmask 523264  }
  0x2c   :  { %73 = vperm.xlu0 %2990, %v66_v4   ;;  %v2910_v12 = vpack.c.bf16 %v95_v11, %v94_v10  ;;  %v96_v13 = vld [vmem:[%s4109_s1 + $0x20] sm:$0xff]  ;;  %v97_v14 = vld [vmem:[%s4109_s1 + $0x28] sm:$0xff]  ;;  %v98_v15 = vld [vmem:[%s4109_s1 + $0x30] sm:$0xff]  ;;  %vm3206_vm8 = vmmov 0   ;;  %vm2276_vm9 = vcmask 1040384   ;;  %vm2281_vm10 = vcmask 1041408  }
  0x2d   :  { %2907 = vmatprep.subr.bf16.mxu0 %v2906_v9  ;;  %v99_v16 = vld [vmem:[%s4109_s1 + $0x38] sm:$0xff]  ;;  %v2914_v17 = vpack.c.bf16 %v97_v14, %v96_v13  ;;  %v100_v19 = vld [vmem:[%s4109_s1 + $0x40] sm:$0xff]  ;;  %v101_v20 = vld [vmem:[%s4109_s1 + $0x48] sm:$0xff]  ;;  %vm2286_vm11 = vcmask 1042432   ;;  %vm2295_vm12 = vcmask 1044480   ;;  %vm2300_vm13 = vcmask 1045504  }
  0x2e   :  { %2909 = vmatpush3.bf16.msra.mxu0 %v2906_v9  ;;  %v2918_v18 = vpack.c.bf16 %v99_v16, %v98_v15  ;;  %v2922_v21 = vpack.c.bf16 %v101_v20, %v100_v19  ;;  %v102_v22 = vld [vmem:[%s4109_s1 + $0x50] sm:$0xff]  ;;  %v103_v23 = vld [vmem:[%s4109_s1 + $0x58] sm:$0xff]  ;;  %v104_v25 = vld [vmem:[%s4109_s1 + $0x60] sm:$0xf]  ;;  %vm2305_vm14 = vcmask 1046528   ;;  %vm2618_vm15 = vcmask 64512  }
  0x2f   :  { %82 = vperm.xlu1 %2991, %v69_v5   ;;  %2911 = vmatprep.subr.bf16.mxu0 %v2910_v12  ;;  %v2926_v24 = vpack.c.bf16 %v103_v23, %v102_v22  ;;  %v226_v36 = vld [vmem:[%s4110_s2 + $0x8] sm:$0xff]  ;;  %v228_v37 = vld [vmem:[%s4110_s2 + $0x18] sm:$0xff]  ;;  %v225_v38 = vld [vmem:[%s4110_s2] sm:$0xff]  ;;  %v3481_v22 = vshrl.u32 %v70_v26, 7 }
  0x30   :  { %76 = vperm.xlu0 %2990, %v67_v8   ;;  %v2930_v39 = vpack.c.bf16 %v228_v37, %v226_v36  ;;  %v227_v40 = vld [vmem:[%s4110_s2 + $0x10] sm:$0xff]  ;;  %v230_v41 = vld [vmem:[%s4110_s2 + $0x28] sm:$0xff]  ;;  %v232_v42 = vld [vmem:[%s4110_s2 + $0x38] sm:$0xff] }
  0x31   :  { %v2932_v43 = vpack.c.bf16 %v227_v40, %v225_v38  ;;  %v2934_v44 = vpack.c.bf16 %v232_v42, %v230_v41  ;;  %v229_v45 = vld [vmem:[%s4110_s2 + $0x20] sm:$0xff]  ;;  %v231_v46 = vld [vmem:[%s4110_s2 + $0x30] sm:$0xff]  ;;  %v234_v47 = vld [vmem:[%s4110_s2 + $0x48] sm:$0xff]  ;;  %v3484_v23 = vsub.s32 0, %v3481_v22 }
  0x32   :  { %2913 = vmatpush3.bf16.msra.mxu0 %v2910_v12  ;;  %2931 = vmatprep.subr.bf16.mxu1 %v2930_v39  ;;  %v236_v48 = vld [vmem:[%s4110_s2 + $0x58] sm:$0xff]  ;;  %v2936_v49 = vpack.c.bf16 %v231_v46, %v229_v45  ;;  %v233_v51 = vld [vmem:[%s4110_s2 + $0x40] sm:$0xff]  ;;  %v235_v52 = vld [vmem:[%s4110_s2 + $0x50] sm:$0xff] }
  0x33   :  { %2915 = vmatprep.subr.bf16.mxu0 %v2914_v17  ;;  %2933 = vmatpush1.bf16.msra.mxu1 %v2932_v43  ;;  %v2938_v50 = vpack.c.bf16 %v236_v48, %v234_v47  ;;  %v238_v53 = vld [vmem:[%s4110_s2 + $0x68] sm:$0xff]  ;;  %v240_v54 = vld [vmem:[%s4110_s2 + $0x78] sm:$0xff]  ;;  %v2940_v55 = vpack.c.bf16 %v235_v52, %v233_v51  ;;  %v237_v57 = vld [vmem:[%s4110_s2 + $0x60] sm:$0xff] }
  0x34   :  { %2935 = vmatprep.subr.bf16.mxu1 %v2934_v44  ;;  %v2942_v56 = vpack.c.bf16 %v240_v54, %v238_v53  ;;  %v239_v58 = vld [vmem:[%s4110_s2 + $0x70] sm:$0xff]  ;;  %v3403_v60 = vld [vmem:[%s4111_s3 + $0x4] ss:$8 sps:$4 sm:$0xff]   ;;  %v3408_v61 = vld [vmem:[%s4111_s3] ss:$8 sps:$4 sm:$0xff]  }
  0x35   :  { %v2944_v59 = vpack.c.bf16 %v239_v58, %v237_v57  ;;  %v3416_v62 = vld [vmem:[%s4111_s3 + $0x14] ss:$8 sps:$4 sm:$0xff]   ;;  %v3421_v63 = vld [vmem:[%s4111_s3 + $0x10] ss:$8 sps:$4 sm:$0xff]   ;;  %v3428_v4 = vld [vmem:[%s4111_s3 + $0x24] ss:$8 sps:$4 sm:$0xff]  }
  0x36   :  { %2917 = vmatpush3.bf16.msra.mxu0 %v2914_v17  ;;  %v3433_v5 = vld [vmem:[%s4111_s3 + $0x20] ss:$8 sps:$4 sm:$0xff]   ;;  %v3440_v9 = vld [vmem:[%s4111_s3 + $0x34] ss:$8 sps:$4 sm:$0xff]   ;;  %v3445_v11 = vld [vmem:[%s4111_s3 + $0x30] ss:$8 sps:$4 sm:$0xff]  }
  0x37   :  { %2919 = vmatprep.subr.bf16.mxu0 %v2918_v18  ;;  %2937 = vmatpush1.bf16.msra.mxu1 %v2936_v49 }
  0x38   :  { %2939 = vmatprep.subr.bf16.mxu1 %v2938_v50 }
  0x3a   :  { %2921 = vmatpush3.bf16.msra.mxu0 %v2918_v18 }
  0x3b   :  { %2923 = vmatprep.subr.bf16.mxu0 %v2922_v21  ;;  %2941 = vmatpush1.bf16.msra.mxu1 %v2940_v55 }
  0x3c   :  { %2943 = vmatprep.subr.bf16.mxu1 %v2942_v56 }
  0x3e   :  { %2925 = vmatpush3.bf16.msra.mxu0 %v2922_v21 }
  0x3f   :  { %2927 = vmatprep.subr.bf16.mxu0 %v2926_v24  ;;  %2945 = vmatpush1.bf16.msra.mxu1 %v2944_v59 }
  0x40   :  { %426 = vmatprep.subr.bf16.mxu1 %v3403_v60 }
  0x42   :  { %2929 = vmatpush3.bf16.msra.mxu0 %v2926_v24  ;;  %v223_v24 = vld [vmem:[%s4112_s4] sm:$0x3]  ;;  %s3205_s4 = smov 64  }
  0x43   :  { %2878 = vmatprep.subr.msk.mxu0 %vm118_vm0, %v104_v25 }
  0x46   :  { %2879 = vmatpush3.msk.msra.mxu0 %vm118_vm0, %v104_v25 }
  0x47   :  { %496 = vmatprep.subr.bf16.mxu0 %v3403_v60 }
  0xaa   :  { %v80_v28 = vpop.permute.xlu1 %79 }
  0xab   :  { %v74_v29 = vpop.permute.xlu0 %73  ;;  %vm86_vm3 = vcmp.eq.s32.totalorder %v71_v27, %v80_v28 }
  0xac   :  { %vm84_vm2 = vcmp.eq.s32.totalorder %v71_v27, %v74_v29  ;;  %v90_v33 = vsel %vm86_vm3, 1.0, %v3203_v2  ;;  %v274_v29 = vrot.slane %v223_v24, %v3484_v23  ;;  %vm2760_vm3 = vcmask 519168  }
  0xad   :  { %v88_v30 = vsel %vm84_vm2, 1.0, %v3203_v2  ;;  %vm2757_vm2 = vcmask 1043459  }
  0xae   :  { %2880 = vmatprep.mubr.msk.f32.mxu0 %vm105_vm1, %v88_v30  ;;  %v83_v31 = vpop.permute.xlu1 %82 }
  0xaf   :  { %v77_v32 = vpop.permute.xlu0 %76  ;;  %vm87_vm5 = vcmp.eq.s32.totalorder %v71_v27, %v83_v31 }
  0xb0   :  { %vm85_vm4 = vcmp.eq.s32.totalorder %v71_v27, %v77_v32  ;;  %v91_v35 = vsel %vm87_vm5, 1.0, %v3203_v2  ;;  %v277_v27 = vsub.s32 1, %v3481_v22 }
  0xb1   :  { %v89_v34 = vsel %vm85_vm4, 1.0, %v3203_v2  ;;  %vm2772_vm4 = vcmask 3072  }
  0xb2   :  { %2881 = vmatmul.mubr.msk.f32.vlgmr.msra.gmra.mrb[0].mxu0 %vm105_vm1, %v89_v34  ;;  %v278_v30 = vrot.slane %v223_v24, %v277_v27 }
  0xb3   :  { %2883 = vmatprep.mubr.msk.f32.mxu0 %vm105_vm1, %v90_v33  ;;  %497 = vmatpush1.bf16.msra.mxu0 %v3408_v61 }
  0xb4   :  { %498 = vmatprep.subr.bf16.mxu0 %v3416_v62 }
  0xb6   :  { %2884 = vmatmul.mubr.msk.f32.gmra.mrb[2].mxu0 %vm105_vm1, %v91_v35  ;;  %vm2754_vm1 = vcmask 1042434  }
  0xb7   :  { %528 = vmatprep.mubr.bf16.mxu0 %v3202_v1  ;;  %499 = vmatpush1.bf16.msra.mxu0 %v3421_v63 }
  0xb8   :  { %500 = vmatprep.subr.bf16.mxu0 %v3428_v4 }
  0xbb   :  { %501 = vmatpush1.bf16.msra.mxu0 %v3433_v5 }
  0xbc   :  { %502 = vmatprep.subr.bf16.mxu0 %v3440_v9 }
  0xbf   :  { %503 = vmatpush1.bf16.msra.mxu0 %v3445_v11 }
  0xc0   :  { %650 = vmatprep.subr.bf16.mxu0 %v3403_v60 }
 0x185   :  { %v2882_v0 = vpop.f32.mrb[0].mxu0 }
 0x186   :  { %v188_v3 = vpop.f32.mrb[1].mxu0  ;;  %v255_v12 = vrot.slane %v2882_v0, 4 }
 0x187   :  { %v261_v13 = vrot.slane %v188_v3, 4 }
 0x189   :  { %v2885_v6 = vpop.f32.mrb[2].mxu0 }
 0x18a   :  { %v242_v7 = vrot.slane %v2885_v6, 4  ;;  %v198_v8 = vpop.f32.mrb[3].mxu0 }
 0x18b   :  { %v249_v10 = vrot.slane %v198_v8, 4 }
 0x18c   :  { %243 = vrot.lane.b32.xlu0 %v242_v7, %s3204_s26 }
 0x18d   :  { %250 = vrot.lane.b32.xlu1 %v249_v10, %s3204_s26 }
 0x190   :  { %256 = vrot.lane.b32.xlu0 %v255_v12, %s3204_s26 }
 0x191   :  { %262 = vrot.lane.b32.xlu1 %v261_v13, %s3204_s26 }
 0x1fe   :  { %v244_v14 = vpop.permute.xlu0 %243 }
 0x1ff   :  { %v247_v15 = vsel %vm246_vm6, %v188_v3, %v244_v14  ;;  %v251_v16 = vpop.permute.xlu1 %250 }
 0x200   :  { %2785 = vmatmul.mubr.msk.f32.vlgmr.msra.gmra.mrb[0].mxu1 %vm281_vm7, %v247_v15  ;;  %v253_v17 = vsel %vm246_vm6, %v2882_v0, %v251_v16 }
 0x201   :  { %427 = vmatpush1.bf16.msra.mxu1 %v3408_v61  ;;  %364 = vmatprep.mubr.f32.mxu1 %v3203_v2 }
 0x202   :  { %428 = vmatprep.subr.bf16.mxu1 %v3416_v62  ;;  %v257_v18 = vpop.permute.xlu0 %256 }
 0x203   :  { %v259_v19 = vsel %vm246_vm6, %v198_v8, %v257_v18  ;;  %v263_v20 = vpop.permute.xlu1 %262 }
 0x204   :  { %2786 = vmatmul.mubr.msk.f32.gmra.mrb[2].mxu1 %vm281_vm7, %v253_v17  ;;  %v265_v21 = vsel %vm246_vm6, %v2885_v6, %v263_v20 }
 0x205   :  { %429 = vmatpush1.bf16.msra.mxu1 %v3421_v63  ;;  %370 = vmatprep.mubr.f32.mxu1 %v3203_v2 }
 0x206   :  { %430 = vmatprep.subr.bf16.mxu1 %v3428_v4 }
 0x208   :  { %2787 = vmatmul.mubr.msk.f32.gmra.mrb[4].mxu1 %vm281_vm7, %v259_v19 }
 0x209   :  { %431 = vmatpush1.bf16.msra.mxu1 %v3433_v5  ;;  %376 = vmatprep.mubr.f32.mxu1 %v3203_v2 }
 0x20a   :  { %432 = vmatprep.subr.bf16.mxu1 %v3440_v9 }
 0x20c   :  { %2788 = vmatmul.mubr.msk.f32.gmra.mrb[6].mxu1 %vm281_vm7, %v265_v21 }
 0x20d   :  { %433 = vmatpush1.bf16.msra.mxu1 %v3445_v11  ;;  %458 = vmatprep.mubr.bf16.mxu1 %v3202_v1 }
 0x20e   :  { %577 = vmatprep.subr.bf16.mxu1 %v3403_v60 }
 0x210   :  { %459 = vmatmul.mubr.bf16.vlgmr.msra.gmra.mrb[8].mxu1 %v3202_v1 }
 0x211   :  { %578 = vmatpush1.bf16.msra.mxu1 %v3408_v61  ;;  %609 = vmatprep.mubr.bf16.mxu1 %v3202_v1 }
 0x212   :  { %579 = vmatprep.subr.bf16.mxu1 %v3416_v62 }
 0x215   :  { %580 = vmatpush1.bf16.msra.mxu1 %v3421_v63 }
 0x216   :  { %581 = vmatprep.subr.bf16.mxu1 %v3428_v4 }
 0x219   :  { %582 = vmatpush1.bf16.msra.mxu1 %v3433_v5 }
 0x21a   :  { %583 = vmatprep.subr.bf16.mxu1 %v3440_v9 }
 0x21d   :  { %584 = vmatpush1.bf16.msra.mxu1 %v3445_v11 }
 0x21e   :  { %731 = vmatprep.subr.bf16.mxu1 %v3403_v60 }
 0x2d3   :  { %v360_v25 = vpop.f32.mrb[0].mxu1 }
 0x2d4   :  { %v362_v28 = vpop.f32.mrb[1].mxu1  ;;  %v361_v49 = vadd.f32 %v360_v25, %v274_v29 }
 0x2d5   :  { %v363_v42 = vadd.f32 %v362_v28, %v278_v30 }
 0x2d7   :  { %v366_v31 = vpop.f32.mrb[2].mxu1 }
 0x2d8   :  { %v3493_v32 = vadd.f32 %v366_v31, %v274_v29  ;;  %v368_v26 = vpop.f32.mrb[3].mxu1 }
 0x2d9   :  { %v3495_v33 = vadd.f32 %v368_v26, %v278_v30 }
 0x2db   :  { %v372_v34 = vpop.f32.mrb[4].mxu1 }
 0x2dc   :  { %v3497_v35 = vadd.f32 %v372_v34, %v274_v29  ;;  %v374_v36 = vpop.f32.mrb[5].mxu1 }
 0x2dd   :  { %v3499_v37 = vadd.f32 %v374_v36, %v278_v30 }
 0x2df   :  { %v378_v38 = vpop.f32.mrb[6].mxu1 }
 0x2e0   :  { %v3501_v39 = vadd.f32 %v378_v38, %v274_v29  ;;  %v380_v40 = vpop.f32.mrb[7].mxu1 }
 0x2e1   :  { %v3503_v41 = vadd.f32 %v380_v40, %v278_v30 }
 0x2e3   :  { %v460_v43 = vpop.f32.mrb[8].mxu1 }
 0x2e4   :  { %v462_v44 = vpop.f32.mrb[9].mxu1  ;;  %v467_v50 = vadd.f32 %v460_v43, %v361_v49 }
 0x2e5   :  { %v468_v45 = vadd.f32 %v462_v44, %v363_v42  ;;  %v464_v46 = vpop.f32.mrb[10].mxu1 }
 0x2e6   :  { %v465_v47 = vpop.f32.mrb[11].mxu1 }
 0x2e7   :  { %3036 = vtanh.f32 %v468_v45 }
 0x2e8   :  { %3038 = vtanh.f32 %v467_v50 }
 0x2f1   :  { %v3037_v48 = vpop.eup %3036 }
 0x2f2   :  { %477 = vrot.lane.b32.xlu0 %v3037_v48, %s3205_s4  ;;  %v3039_v51 = vpop.eup %3038  ;;  %v472_v0 = vmul.f32 0.5, %v3037_v48 }
 0x2f3   :  { %v471_v52 = vmul.f32 0.5, %v3039_v51 }
 0x2f4   :  { %v474_v3 = vadd.f32 0.5, %v472_v0 }
 0x2f5   :  { %v473_v53 = vadd.f32 0.5, %v471_v52 }
 0x2f7   :  { %v475_v56 = vmul.f32 0.0, %v473_v53 }
 0x364   :  { %v478_v54 = vpop.permute.xlu0 %477 }
 0x365   :  { %v480_v55 = vmul.f32 %v478_v54, %v473_v53 }
 0x367   :  { %482 = vrot.lane.b32.xlu1 %v480_v55, %s3205_s4 }
 0x3d9   :  { %v483_v57 = vpop.permute.xlu1 %482 }
 0x3da   :  { %v485_v58 = vadd.f32 %v483_v57, %v475_v56 }
 0x3dc   :  { %3040 = vtanh.f32 %v485_v58  ;;  %v552_v29 = vrot.slane %v485_v58, 4 }
 0x3e6   :  { %v3041_v59 = vpop.eup %3040 }
 0x3e7   :  { %488 = vrot.lane.b32.xlu0 %v3041_v59, %s3205_s4 }
 0x459   :  { %v489_v6 = vpop.permute.xlu0 %488 }
 0x45a   :  { %v3508_v7 = vmul.f32 %v489_v6, %v474_v3 }
 0x45c   :  { %v492_v8 = vpack.c.bf16 %v3508_v7, %v3508_v7 }
 0x45e   :  { %2797 = vmatmul.mubr.msk.bf16.vlgmr.msra.gmra.mrb[4].mxu0 %vm281_vm7, %v492_v8 }
 0x45f   :  { %651 = vmatpush1.bf16.msra.mxu0 %v3408_v61  ;;  %682 = vmatprep.mubr.bf16.mxu0 %v3202_v1 }
 0x460   :  { %652 = vmatprep.subr.bf16.mxu0 %v3416_v62 }
 0x463   :  { %653 = vmatpush1.bf16.msra.mxu0 %v3421_v63 }
 0x464   :  { %654 = vmatprep.subr.bf16.mxu0 %v3428_v4 }
 0x467   :  { %655 = vmatpush1.bf16.msra.mxu0 %v3433_v5 }
 0x468   :  { %656 = vmatprep.subr.bf16.mxu0 %v3440_v9 }
 0x46b   :  { %657 = vmatpush1.bf16.msra.mxu0 %v3445_v11 }
 0x46c   :  { %804 = vmatprep.subr.bf16.mxu0 %v3403_v60 }
 0x531   :  { %v530_v10 = vpop.f32.mrb[4].mxu0 }
 0x532   :  { %v532_v12 = vpop.f32.mrb[5].mxu0  ;;  %v539_v18 = vrot.slane %v530_v10, 4 }
 0x533   :  { %v540_v13 = vrot.slane %v532_v12, 4  ;;  %v534_v14 = vpop.f32.mrb[6].mxu0 }
 0x534   :  { %v535_v15 = vpop.f32.mrb[7].mxu0  ;;  %v543_v19 = vadd.f32 %v539_v18, %v361_v49 }
 0x535   :  { %v544_v16 = vadd.f32 %v540_v13, %v363_v42 }
 0x537   :  { %3042 = vtanh.f32 %v544_v16 }
 0x538   :  { %3044 = vtanh.f32 %v543_v19 }
 0x541   :  { %v3043_v17 = vpop.eup %3042 }
 0x542   :  { %556 = vrot.lane.b32.xlu1 %v3043_v17, %s3205_s4  ;;  %v3045_v20 = vpop.eup %3044  ;;  %v548_v36 = vmul.f32 0.5, %v3043_v17 }
 0x543   :  { %v547_v21 = vmul.f32 0.5, %v3045_v20 }
 0x544   :  { %v550_v38 = vadd.f32 0.5, %v548_v36 }
 0x545   :  { %v549_v24 = vadd.f32 0.5, %v547_v21 }
 0x547   :  { %v554_v30 = vmul.f32 %v552_v29, %v549_v24 }
 0x5b4   :  { %v557_v25 = vpop.permute.xlu1 %556 }
 0x5b5   :  { %v559_v28 = vmul.f32 %v557_v25, %v549_v24 }
 0x5b7   :  { %561 = vrot.lane.b32.xlu0 %v559_v28, %s3205_s4 }
 0x629   :  { %v562_v31 = vpop.permute.xlu0 %561 }
 0x62a   :  { %v564_v26 = vadd.f32 %v562_v31, %v554_v30 }
 0x62c   :  { %3046 = vtanh.f32 %v564_v26  ;;  %v627_v57 = vrot.slane %v564_v26, 4 }
 0x636   :  { %v3047_v34 = vpop.eup %3046 }
 0x637   :  { %567 = vrot.lane.b32.xlu1 %v3047_v34, %s3205_s4 }
 0x6a9   :  { %v568_v40 = vpop.permute.xlu1 %567 }
 0x6aa   :  { %v3525_v42 = vmul.f32 %v568_v40, %v550_v38 }
 0x6ac   :  { %v571_v43 = vpack.c.bf16 %v3525_v42, %v3525_v42 }
 0x6ae   :  { %v573_v44 = vrot.slane %v571_v43, 2 }
 0x6b0   :  { %2798 = vmatmul.mubr.msk.bf16.vlgmr.msra.gmra.mrb[12].mxu1 %vm281_vm7, %v573_v44 }
 0x6b1   :  { %732 = vmatpush1.bf16.msra.mxu1 %v3408_v61  ;;  %763 = vmatprep.mubr.bf16.mxu1 %v3202_v1 }
 0x6b2   :  { %733 = vmatprep.subr.bf16.mxu1 %v3416_v62 }
 0x6b5   :  { %734 = vmatpush1.bf16.msra.mxu1 %v3421_v63 }
 0x6b6   :  { %735 = vmatprep.subr.bf16.mxu1 %v3428_v4 }
 0x6b9   :  { %736 = vmatpush1.bf16.msra.mxu1 %v3433_v5 }
 0x6ba   :  { %737 = vmatprep.subr.bf16.mxu1 %v3440_v9 }
 0x6bd   :  { %738 = vmatpush1.bf16.msra.mxu1 %v3445_v11 }
 0x6be   :  { %885 = vmatprep.subr.bf16.mxu1 %v3403_v60 }
 0x783   :  { %v611_v45 = vpop.f32.mrb[12].mxu1 }
 0x784   :  { %v613_v46 = vpop.f32.mrb[13].mxu1  ;;  %v618_v51 = vadd.f32 %v611_v45, %v3493_v32 }
 0x785   :  { %v619_v47 = vadd.f32 %v613_v46, %v3495_v33  ;;  %v615_v48 = vpop.f32.mrb[14].mxu1 }
 0x786   :  { %v616_v49 = vpop.f32.mrb[15].mxu1 }
 0x787   :  { %3048 = vtanh.f32 %v619_v47 }
 0x788   :  { %3050 = vtanh.f32 %v618_v51 }
 0x791   :  { %v3049_v50 = vpop.eup %3048 }
 0x792   :  { %631 = vrot.lane.b32.xlu0 %v3049_v50, %s3205_s4  ;;  %v3051_v52 = vpop.eup %3050  ;;  %v623_v6 = vmul.f32 0.5, %v3049_v50 }
 0x793   :  { %v622_v53 = vmul.f32 0.5, %v3051_v52 }
 0x794   :  { %v625_v8 = vadd.f32 0.5, %v623_v6 }
 0x795   :  { %v624_v54 = vadd.f32 0.5, %v622_v53 }
 0x797   :  { %v629_v58 = vmul.f32 %v627_v57, %v624_v54 }
 0x804   :  { %v632_v55 = vpop.permute.xlu0 %631 }
 0x805   :  { %v634_v56 = vmul.f32 %v632_v55, %v624_v54 }
 0x807   :  { %636 = vrot.lane.b32.xlu1 %v634_v56, %s3205_s4 }
 0x879   :  { %v637_v59 = vpop.permute.xlu1 %636 }
 0x87a   :  { %v639_v0 = vadd.f32 %v637_v59, %v629_v58 }
 0x87c   :  { %3052 = vtanh.f32 %v639_v0  ;;  %v706_v31 = vrot.slane %v639_v0, 4 }
 0x886   :  { %v3053_v3 = vpop.eup %3052 }
 0x887   :  { %642 = vrot.lane.b32.xlu0 %v3053_v3, %s3205_s4 }
 0x8f9   :  { %v643_v10 = vpop.permute.xlu0 %642 }
 0x8fa   :  { %v3544_v12 = vmul.f32 %v643_v10, %v625_v8 }
 0x8fc   :  { %v646_v13 = vpack.c.bf16 %v3544_v12, %v3544_v12 }
 0x8fe   :  { %2799 = vmatmul.mubr.msk.bf16.vlgmr.msra.gmra.mrb[8].mxu0 %vm281_vm7, %v646_v13 }
 0x8ff   :  { %805 = vmatpush1.bf16.msra.mxu0 %v3408_v61  ;;  %836 = vmatprep.mubr.bf16.mxu0 %v3202_v1 }
 0x900   :  { %806 = vmatprep.subr.bf16.mxu0 %v3416_v62 }
 0x903   :  { %807 = vmatpush1.bf16.msra.mxu0 %v3421_v63 }
 0x904   :  { %808 = vmatprep.subr.bf16.mxu0 %v3428_v4 }
 0x907   :  { %809 = vmatpush1.bf16.msra.mxu0 %v3433_v5 }
 0x908   :  { %810 = vmatprep.subr.bf16.mxu0 %v3440_v9 }
 0x90b   :  { %811 = vmatpush1.bf16.msra.mxu0 %v3445_v11 }
 0x90c   :  { %958 = vmatprep.subr.bf16.mxu0 %v3403_v60 }
 0x9d1   :  { %v684_v14 = vpop.f32.mrb[8].mxu0 }
 0x9d2   :  { %v686_v15 = vpop.f32.mrb[9].mxu0  ;;  %v693_v21 = vrot.slane %v684_v14, 4 }
 0x9d3   :  { %v694_v16 = vrot.slane %v686_v15, 4  ;;  %v688_v17 = vpop.f32.mrb[10].mxu0 }
 0x9d4   :  { %v689_v18 = vpop.f32.mrb[11].mxu0  ;;  %v697_v24 = vadd.f32 %v693_v21, %v3493_v32 }
 0x9d5   :  { %v698_v19 = vadd.f32 %v694_v16, %v3495_v33 }
 0x9d7   :  { %3054 = vtanh.f32 %v698_v19 }
 0x9d8   :  { %3056 = vtanh.f32 %v697_v24 }
 0x9e1   :  { %v3055_v20 = vpop.eup %3054 }
 0x9e2   :  { %710 = vrot.lane.b32.xlu1 %v3055_v20, %s3205_s4  ;;  %v3057_v25 = vpop.eup %3056  ;;  %v702_v38 = vmul.f32 0.5, %v3055_v20 }
 0x9e3   :  { %v701_v28 = vmul.f32 0.5, %v3057_v25 }
 0x9e4   :  { %v704_v40 = vadd.f32 0.5, %v702_v38 }
 0x9e5   :  { %v703_v29 = vadd.f32 0.5, %v701_v28 }
 0x9e7   :  { %v708_v26 = vmul.f32 %v706_v31, %v703_v29 }
 0xa54   :  { %v711_v30 = vpop.permute.xlu1 %710 }
 0xa55   :  { %v713_v60 = vmul.f32 %v711_v30, %v703_v29 }
 0xa57   :  { %715 = vrot.lane.b32.xlu0 %v713_v60, %s3205_s4 }
 0xac9   :  { %v716_v34 = vpop.permute.xlu0 %715 }
 0xaca   :  { %v718_v36 = vadd.f32 %v716_v34, %v708_v26 }
 0xacc   :  { %3058 = vtanh.f32 %v718_v36  ;;  %v781_v58 = vrot.slane %v718_v36, 4 }
 0xad6   :  { %v3059_v33 = vpop.eup %3058 }
 0xad7   :  { %721 = vrot.lane.b32.xlu1 %v3059_v33, %s3205_s4 }
 0xb49   :  { %v722_v43 = vpop.permute.xlu1 %721 }
 0xb4a   :  { %v3563_v32 = vmul.f32 %v722_v43, %v704_v40 }
 0xb4c   :  { %v725_v44 = vpack.c.bf16 %v3563_v32, %v3563_v32 }
 0xb4e   :  { %v727_v45 = vrot.slane %v725_v44, 2 }
 0xb50   :  { %2800 = vmatmul.mubr.msk.bf16.vlgmr.msra.gmra.mrb[16].mxu1 %vm281_vm7, %v727_v45 }
 0xb51   :  { %886 = vmatpush1.bf16.msra.mxu1 %v3408_v61  ;;  %917 = vmatprep.mubr.bf16.mxu1 %v3202_v1 }
 0xb52   :  { %887 = vmatprep.subr.bf16.mxu1 %v3416_v62 }
 0xb55   :  { %888 = vmatpush1.bf16.msra.mxu1 %v3421_v63 }
 0xb56   :  { %889 = vmatprep.subr.bf16.mxu1 %v3428_v4 }
 0xb59   :  { %890 = vmatpush1.bf16.msra.mxu1 %v3433_v5 }
 0xb5a   :  { %891 = vmatprep.subr.bf16.mxu1 %v3440_v9 }
 0xb5d   :  { %892 = vmatpush1.bf16.msra.mxu1 %v3445_v11 }
 0xc23   :  { %v765_v46 = vpop.f32.mrb[16].mxu1 }
 0xc24   :  { %v767_v47 = vpop.f32.mrb[17].mxu1  ;;  %v772_v52 = vadd.f32 %v765_v46, %v3497_v35 }
 0xc25   :  { %v773_v48 = vadd.f32 %v767_v47, %v3499_v37  ;;  %v769_v49 = vpop.f32.mrb[18].mxu1 }
 0xc26   :  { %v770_v50 = vpop.f32.mrb[19].mxu1 }
 0xc27   :  { %3060 = vtanh.f32 %v773_v48 }
 0xc28   :  { %3062 = vtanh.f32 %v772_v52 }
 0xc31   :  { %v3061_v51 = vpop.eup %3060 }
 0xc32   :  { %785 = vrot.lane.b32.xlu0 %v3061_v51, %s3205_s4  ;;  %v3063_v53 = vpop.eup %3062  ;;  %v777_v8 = vmul.f32 0.5, %v3061_v51 }
 0xc33   :  { %v776_v54 = vmul.f32 0.5, %v3063_v53 }
 0xc34   :  { %v779_v10 = vadd.f32 0.5, %v777_v8 }
 0xc35   :  { %v778_v55 = vadd.f32 0.5, %v776_v54 }
 0xc37   :  { %v783_v59 = vmul.f32 %v781_v58, %v778_v55 }
 0xca4   :  { %v786_v56 = vpop.permute.xlu0 %785 }
 0xca5   :  { %v788_v57 = vmul.f32 %v786_v56, %v778_v55 }
 0xca7   :  { %790 = vrot.lane.b32.xlu1 %v788_v57, %s3205_s4 }
 0xd19   :  { %v791_v0 = vpop.permute.xlu1 %790 }
 0xd1a   :  { %v793_v3 = vadd.f32 %v791_v0, %v783_v59 }
 0xd1c   :  { %3064 = vtanh.f32 %v793_v3  ;;  %v860_v25 = vrot.slane %v793_v3, 4 }
 0xd26   :  { %v3065_v6 = vpop.eup %3064 }
 0xd27   :  { %796 = vrot.lane.b32.xlu0 %v3065_v6, %s3205_s4 }
 0xd99   :  { %v797_v13 = vpop.permute.xlu0 %796 }
 0xd9a   :  { %v3581_v14 = vmul.f32 %v797_v13, %v779_v10 }
 0xd9c   :  { %v800_v15 = vpack.c.bf16 %v3581_v14, %v3581_v14  ;;  %v1046_v31 = vrot.slane %v3581_v14, 4 }
 0xd9e   :  { %2801 = vmatmul.mubr.msk.bf16.vlgmr.msra.gmra.mrb[12].mxu0 %vm281_vm7, %v800_v15  ;;  %v3607_v38 = vsel %vm246_vm6, %v3563_v32, %v1046_v31  ;;  %v1068_v31 = vld [vmem:[#allocation3 + $0x18] sm:$0xff] }
 0xd9f   :  { %959 = vmatpush1.bf16.msra.mxu0 %v3408_v61  ;;  %990 = vmatprep.mubr.bf16.mxu0 %v3202_v1  ;;  %v1122_v44 = vrot.slane %v3607_v38, 4 }
 0xda0   :  { %960 = vmatprep.subr.bf16.mxu0 %v3416_v62 }
 0xda3   :  { %961 = vmatpush1.bf16.msra.mxu0 %v3421_v63 }
 0xda4   :  { %962 = vmatprep.subr.bf16.mxu0 %v3428_v4 }
 0xda7   :  { %963 = vmatpush1.bf16.msra.mxu0 %v3433_v5 }
 0xda8   :  { %964 = vmatprep.subr.bf16.mxu0 %v3440_v9 }
 0xdab   :  { %965 = vmatpush1.bf16.msra.mxu0 %v3445_v11 }
 0xe71   :  { %v838_v16 = vpop.f32.mrb[12].mxu0 }
 0xe72   :  { %v840_v17 = vpop.f32.mrb[13].mxu0  ;;  %v847_v62 = vrot.slane %v838_v16, 4 }
 0xe73   :  { %v848_v18 = vrot.slane %v840_v17, 4  ;;  %v842_v19 = vpop.f32.mrb[14].mxu0 }
 0xe74   :  { %v843_v20 = vpop.f32.mrb[15].mxu0  ;;  %v851_v63 = vadd.f32 %v847_v62, %v3497_v35 }
 0xe75   :  { %v852_v61 = vadd.f32 %v848_v18, %v3499_v37 }
 0xe77   :  { %3066 = vtanh.f32 %v852_v61 }
 0xe78   :  { %3068 = vtanh.f32 %v851_v63 }
 0xe81   :  { %v3067_v21 = vpop.eup %3066 }
 0xe82   :  { %864 = vrot.lane.b32.xlu1 %v3067_v21, %s3205_s4  ;;  %v3069_v4 = vpop.eup %3068  ;;  %v856_v60 = vmul.f32 0.5, %v3067_v21 }
 0xe83   :  { %v855_v5 = vmul.f32 0.5, %v3069_v4 }
 0xe84   :  { %v858_v35 = vadd.f32 0.5, %v856_v60  ;;  %v1066_v60 = vld [vmem:[#allocation3 + $0x8] sm:$0xff] }
 0xe85   :  { %v857_v9 = vadd.f32 0.5, %v855_v5 }
 0xe87   :  { %v862_v28 = vmul.f32 %v860_v25, %v857_v9 }
 0xef4   :  { %v865_v24 = vpop.permute.xlu1 %864 }
 0xef5   :  { %v867_v11 = vmul.f32 %v865_v24, %v857_v9 }
 0xef7   :  { %869 = vrot.lane.b32.xlu0 %v867_v11, %s3205_s4 }
 0xf69   :  { %v870_v29 = vpop.permute.xlu0 %869 }
 0xf6a   :  { %v872_v30 = vadd.f32 %v870_v29, %v862_v28 }
 0xf6c   :  { %3070 = vtanh.f32 %v872_v30  ;;  %v935_v59 = vrot.slane %v872_v30, 4 }
 0xf76   :  { %v3071_v37 = vpop.eup %3070 }
 0xf77   :  { %875 = vrot.lane.b32.xlu1 %v3071_v37, %s3205_s4 }
 0xfe9   :  { %v876_v26 = vpop.permute.xlu1 %875 }
 0xfea   :  { %v3600_v34 = vmul.f32 %v876_v26, %v858_v35  ;;  %v1065_v35 = vld [vmem:[#allocation3] sm:$0xff]  ;;  %v2946_v26 = vpack.c.bf16 %v1068_v31, %v1066_v60  ;;  %v1091_v60 = vld [vmem:[#allocation3 + $0xd0] sm:$0xff] }
 0xfec   :  { %v879_v36 = vpack.c.bf16 %v3600_v34, %v3600_v34  ;;  %v1042_v33 = vrot.slane %v3600_v34, 4  ;;  %2947 = vmatprep.subr.bf16.mxu1 %v2946_v26  ;;  %v1096_v26 = vld [vmem:[#allocation3 + $0xf8] sm:$0xff] }
 0xfee   :  { %v881_v40 = vrot.slane %v879_v36, 2  ;;  %v3611_v43 = vsel %vm246_vm6, %v3544_v12, %v1042_v33  ;;  %v1067_v36 = vld [vmem:[#allocation3 + $0x10] sm:$0xff]  ;;  %v1070_v33 = vld [vmem:[#allocation3 + $0x28] sm:$0xff] }
 0xfef   :  { %v1128_v45 = vrot.slane %v3611_v43, 4 }
 0xff0   :  { %2802 = vmatmul.mubr.msk.bf16.vlgmr.msra.gmra.mrb[20].mxu1 %vm281_vm7, %v881_v40  ;;  %v2948_v40 = vpack.c.bf16 %v1067_v36, %v1065_v35  ;;  %v1094_v35 = vld [vmem:[#allocation3 + $0xe8] sm:$0xff] }
 0xff1   :  { %1224 = vmatprep.mubr.f32.mxu1 %v3203_v2  ;;  %v3617_v46 = vpack.i.bf16 %v1128_v45, %v1122_v44  ;;  %v1069_v45 = vld [vmem:[#allocation3 + $0x20] sm:$0xff]  ;;  %v2974_v36 = vpack.c.bf16 %v1096_v26, %v1094_v35 }
 0xff2   :  { %2949 = vmatpush1.bf16.msra.mxu1 %v2948_v40  ;;  %v1095_v40 = vld [vmem:[#allocation3 + $0xf0] sm:$0xff] }
0x10c3   :  { %v919_v47 = vpop.f32.mrb[20].mxu1 }
0x10c4   :  { %v921_v48 = vpop.f32.mrb[21].mxu1  ;;  %v926_v53 = vadd.f32 %v919_v47, %v3501_v39  ;;  %v1071_v47 = vld [vmem:[#allocation3 + $0x30] sm:$0xff] }
0x10c5   :  { %v927_v49 = vadd.f32 %v921_v48, %v3503_v41  ;;  %v923_v50 = vpop.f32.mrb[22].mxu1  ;;  %v1074_v48 = vld [vmem:[#allocation3 + $0x48] sm:$0xff] }
0x10c6   :  { %v924_v51 = vpop.f32.mrb[23].mxu1  ;;  %v2952_v50 = vpack.c.bf16 %v1071_v47, %v1069_v45  ;;  %v1058_v47 = vrot.slane %v3525_v42, 4 }
0x10c7   :  { %3072 = vtanh.f32 %v927_v49  ;;  %v1076_v49 = vld [vmem:[#allocation3 + $0x58] sm:$0xff] }
0x10c8   :  { %3074 = vtanh.f32 %v926_v53  ;;  %v1073_v53 = vld [vmem:[#allocation3 + $0x40] sm:$0xff] }
0x10d1   :  { %v3073_v52 = vpop.eup %3072 }
0x10d2   :  { %939 = vrot.lane.b32.xlu0 %v3073_v52, %s3205_s4  ;;  %v3075_v54 = vpop.eup %3074  ;;  %v931_v10 = vmul.f32 0.5, %v3073_v52  ;;  %v2954_v52 = vpack.c.bf16 %v1076_v49, %v1074_v48 }
0x10d3   :  { %v930_v55 = vmul.f32 0.5, %v3075_v54  ;;  %v1075_v54 = vld [vmem:[#allocation3 + $0x50] sm:$0xff] }
0x10d4   :  { %v933_v13 = vadd.f32 0.5, %v931_v10  ;;  %v1079_v10 = vld [vmem:[#allocation3 + $0x70] sm:$0xff] }
0x10d5   :  { %v932_v56 = vadd.f32 0.5, %v930_v55  ;;  %v3637_v55 = vld [vmem:[#allocation5 + $0x4] ss:$8 sps:$4 sm:$0xff]  }
0x10d6   :  { %1289 = vmatprep.subr.bf16.mxu0 %v3637_v55 }
0x10d7   :  { %v937_v0 = vmul.f32 %v935_v59, %v932_v56  ;;  %v3643_v59 = vld [vmem:[#allocation5 + $0x14] ss:$8 sps:$4 sm:$0xff]  }
0x1144   :  { %v940_v57 = vpop.permute.xlu0 %939 }
0x1145   :  { %v942_v58 = vmul.f32 %v940_v57, %v932_v56  ;;  %v1078_v56 = vld [vmem:[#allocation3 + $0x68] sm:$0xff]  ;;  %v1080_v57 = vld [vmem:[#allocation3 + $0x78] sm:$0xff] }
0x1147   :  { %944 = vrot.lane.b32.xlu1 %v942_v58, %s3205_s4  ;;  %v3640_v58 = vld [vmem:[#allocation5] ss:$8 sps:$4 sm:$0xff]  }
0x11b9   :  { %v945_v3 = vpop.permute.xlu1 %944 }
0x11ba   :  { %v947_v6 = vadd.f32 %v945_v3, %v937_v0  ;;  %v2956_v0 = vpack.c.bf16 %v1075_v54, %v1073_v53  ;;  %v3646_v3 = vld [vmem:[#allocation5 + $0x10] ss:$8 sps:$4 sm:$0xff]  }
0x11bc   :  { %3076 = vtanh.f32 %v947_v6  ;;  %v1014_v29 = vrot.slane %v947_v6, 4  ;;  %v2958_v6 = vpack.c.bf16 %v1080_v57, %v1078_v56 }
0x11c6   :  { %v3077_v8 = vpop.eup %3076 }
0x11c7   :  { %950 = vrot.lane.b32.xlu0 %v3077_v8, %s3205_s4  ;;  %v1077_v8 = vld [vmem:[#allocation3 + $0x60] sm:$0xff] }
0x1239   :  { %v951_v15 = vpop.permute.xlu0 %950 }
0x123a   :  { %v3624_v16 = vmul.f32 %v951_v15, %v933_v13  ;;  %v3649_v13 = vld [vmem:[#allocation5 + $0x24] ss:$8 sps:$4 sm:$0xff]  }
0x123b   :  { %v1082_v15 = vld [vmem:[#allocation3 + $0x88] sm:$0xff] }
0x123c   :  { %v954_v17 = vpack.c.bf16 %v3624_v16, %v3624_v16  ;;  %v1038_v57 = vrot.slane %v3624_v16, 4 }
0x123e   :  { %2803 = vmatmul.mubr.msk.bf16.vlgmr.msra.gmra.mrb[16].mxu0 %vm281_vm7, %v954_v17  ;;  %v1084_v17 = vld [vmem:[#allocation3 + $0x98] sm:$0xff] }
0x123f   :  { %1321 = vmatprep.mubr.bf16.mxu0 %v3202_v1  ;;  %1290 = vmatpush1.bf16.msra.mxu0 %v3640_v58 }
0x1240   :  { %1291 = vmatprep.subr.bf16.mxu0 %v3643_v59 }
0x1243   :  { %1292 = vmatpush1.bf16.msra.mxu0 %v3646_v3 }
0x1244   :  { %1293 = vmatprep.subr.bf16.mxu0 %v3649_v13 }
0x1311   :  { %v992_v18 = vpop.f32.mrb[16].mxu0 }
0x1312   :  { %v994_v19 = vpop.f32.mrb[17].mxu0  ;;  %v1001_v4 = vrot.slane %v992_v18, 4  ;;  %v2960_v18 = vpack.c.bf16 %v1079_v10, %v1077_v8 }
0x1313   :  { %v1002_v20 = vrot.slane %v994_v19, 4  ;;  %v996_v61 = vpop.f32.mrb[18].mxu0  ;;  %v3652_v19 = vld [vmem:[#allocation5 + $0x20] ss:$8 sps:$4 sm:$0xff]  }
0x1314   :  { %v997_v21 = vpop.f32.mrb[19].mxu0  ;;  %v1005_v5 = vadd.f32 %v1001_v4, %v3501_v39  ;;  %v1072_v39 = vld [vmem:[#allocation3 + $0x38] sm:$0xff]  ;;  %v1081_v61 = vld [vmem:[#allocation3 + $0x80] sm:$0xff]  ;;  %v1086_v4 = vld [vmem:[#allocation3 + $0xa8] sm:$0xff]  ;;  %1294 = vmatpush1.bf16.msra.mxu0 %v3652_v19 }
0x1315   :  { %v1006_v62 = vadd.f32 %v1002_v20, %v3503_v41  ;;  %v2950_v44 = vpack.c.bf16 %v1072_v39, %v1070_v33  ;;  %v2962_v20 = vpack.c.bf16 %v1084_v17, %v1082_v15  ;;  %v1083_v21 = vld [vmem:[#allocation3 + $0x90] sm:$0xff]  ;;  %v1093_v39 = vld [vmem:[#allocation3 + $0xe0] sm:$0xff]  ;;  %v3694_v17 = vsel %vm246_vm6, %v3525_v42, %v1038_v57 }
0x1316   :  { %v3659_v33 = vld [vmem:[#allocation5 + $0x30] ss:$8 sps:$4 sm:$0xff]  }
0x1317   :  { %3078 = vtanh.f32 %v1006_v62  ;;  %2951 = vmatprep.subr.bf16.mxu1 %v2950_v44  ;;  %v3655_v62 = vld [vmem:[#allocation5 + $0x34] ss:$8 sps:$4 sm:$0xff]   ;;  %v2976_v44 = vpack.c.bf16 %v1095_v40, %v1093_v39 }
0x1318   :  { %3080 = vtanh.f32 %v1005_v5  ;;  %2953 = vmatpush1.bf16.msra.mxu1 %v2952_v50  ;;  %v1088_v5 = vld [vmem:[#allocation3 + $0xb8] sm:$0xff]  ;;  %1295 = vmatprep.subr.bf16.mxu0 %v3655_v62  ;;  %v3673_v50 = vsel %vm246_vm6, %v3624_v16, %v1058_v47 }
0x1319   :  { %2955 = vmatprep.subr.bf16.mxu1 %v2954_v52  ;;  %1296 = vmatpush1.bf16.msra.mxu0 %v3659_v33  ;;  %v1104_v54 = vrot.slane %v3673_v50, 4 }
0x131a   :  { %1359 = vmatprep.subr.bf16.mxu0 %v3637_v55 }
0x131c   :  { %2957 = vmatpush1.bf16.msra.mxu1 %v2956_v0  ;;  %1322 = vmatmul.mubr.bf16.vlgmr.msra.gmra.mrb[20].mxu0 %v3202_v1 }
0x131d   :  { %2959 = vmatprep.subr.bf16.mxu1 %v2958_v6  ;;  %1360 = vmatpush1.bf16.msra.mxu0 %v3640_v58 }
0x131e   :  { %1391 = vmatprep.mubr.bf16.mxu0 %v3202_v1  ;;  %1361 = vmatprep.subr.bf16.mxu0 %v3643_v59 }
0x1320   :  { %2961 = vmatpush1.bf16.msra.mxu1 %v2960_v18 }
0x1321   :  { %v3631_v63 = vpop.eup %3078  ;;  %2963 = vmatprep.subr.bf16.mxu1 %v2962_v20  ;;  %1362 = vmatpush1.bf16.msra.mxu0 %v3646_v3 }
0x1322   :  { %1018 = vrot.lane.b32.xlu1 %v3631_v63, %s3205_s4  ;;  %v3081_v9 = vpop.eup %3080  ;;  %v1010_v45 = vmul.f32 0.5, %v3631_v63  ;;  %v1062_v63 = vrot.slane %v3508_v7, 4  ;;  %1363 = vmatprep.subr.bf16.mxu0 %v3649_v13 }
0x1323   :  { %v1009_v24 = vmul.f32 0.5, %v3081_v9  ;;  %v2964_v9 = vpack.c.bf16 %v1083_v21, %v1081_v61 }
0x1324   :  { %v1012_v48 = vadd.f32 0.5, %v1010_v45 }
0x1325   :  { %v1011_v11 = vadd.f32 0.5, %v1009_v24  ;;  %v2966_v24 = vpack.c.bf16 %v1088_v5, %v1086_v4  ;;  %2965 = vmatpush1.bf16.msra.mxu1 %v2964_v9  ;;  %1364 = vmatpush1.bf16.msra.mxu0 %v3652_v19  ;;  %v224_v4 = vld [vmem:[%s4115_s7] sm:$0x3] }
0x1326   :  { %1365 = vmatprep.subr.bf16.mxu0 %v3655_v62  ;;  %v3715_v5 = vrot.slane %v224_v4, %v277_v27 }
0x1327   :  { %v1016_v30 = vmul.f32 %v1014_v29, %v1011_v11  ;;  %v1092_v29 = vld [vmem:[#allocation3 + $0xd8] sm:$0xff]  ;;  %2967 = vmatprep.subr.bf16.mxu1 %v2966_v24 }
0x1329   :  { %1366 = vmatpush1.bf16.msra.mxu0 %v3659_v33 }
0x132a   :  { %1513 = vmatprep.subr.bf16.mxu0 %v3637_v55 }
0x1394   :  { %v1019_v25 = vpop.permute.xlu1 %1018 }
0x1395   :  { %v1021_v28 = vmul.f32 %v1019_v25, %v1011_v11  ;;  %v1085_v11 = vld [vmem:[#allocation3 + $0xa0] sm:$0xff]  ;;  %v1087_v25 = vld [vmem:[#allocation3 + $0xb0] sm:$0xff] }
0x1397   :  { %1023 = vrot.lane.b32.xlu0 %v1021_v28, %s3205_s4  ;;  %v1090_v28 = vld [vmem:[#allocation3 + $0xc8] sm:$0xff] }
0x1409   :  { %v1024_v41 = vpop.permute.xlu0 %1023 }
0x140a   :  { %v1026_v37 = vadd.f32 %v1024_v41, %v1016_v30  ;;  %v2968_v30 = vpack.c.bf16 %v1087_v25, %v1085_v11  ;;  %v2970_v41 = vpack.c.bf16 %v1092_v29, %v1090_v28  ;;  %v3720_v29 = vrot.slane %v224_v4, %v3484_v23 }
0x140c   :  { %3082 = vtanh.f32 %v1026_v37  ;;  %v1089_v37 = vld [vmem:[#allocation3 + $0xc0] sm:$0xff]  ;;  %2969 = vmatpush1.bf16.msra.mxu1 %v2968_v30 }
0x140d   :  { %v2972_v31 = vpack.c.bf16 %v1091_v60, %v1089_v37  ;;  %2971 = vmatprep.subr.bf16.mxu1 %v2970_v41 }
0x1410   :  { %2973 = vmatpush1.bf16.msra.mxu1 %v2972_v31 }
0x1411   :  { %2975 = vmatprep.subr.bf16.mxu1 %v2974_v36 }
0x1414   :  { %2977 = vmatpush1.bf16.msra.mxu1 %v2976_v44 }
0x1415   :  { %1440 = vmatprep.subr.bf16.mxu1 %v3637_v55 }
0x1416   :  { %v3083_v51 = vpop.eup %3082 }
0x1417   :  { %1029 = vrot.lane.b32.xlu1 %v3083_v51, %s3205_s4 }
0x1489   :  { %v1030_v49 = vpop.permute.xlu1 %1029 }
0x148a   :  { %v1032_v51 = vmul.f32 %v1030_v49, %v1012_v48 }
0x148c   :  { %v3676_v52 = vsel %vm246_vm6, %v1032_v51, %v1062_v63  ;;  %v1034_v0 = vrot.slane %v1032_v51, 4 }
0x148d   :  { %v1098_v53 = vrot.slane %v3676_v52, 4 }
0x148e   :  { %v3690_v15 = vsel %vm246_vm6, %v3508_v7, %v1034_v0  ;;  %v1323_v7 = vpop.f32.mrb[20].mxu0  ;;  %v1054_v0 = vrot.slane %v3544_v12, 4  ;;  %v1134_v12 = vrot.slane %v3694_v17, 4 }
0x148f   :  { %v2992_v56 = vpack.i.bf16 %v1104_v54, %v1098_v53  ;;  %v1325_v42 = vpop.f32.mrb[21].mxu0 }
0x1490   :  { %v1327_v61 = vpop.f32.mrb[22].mxu0 }
0x1491   :  { %2993 = vrot.lane.b32.xlu0 %v2992_v56, %s3205_s4  ;;  %v1328_v21 = vpop.f32.mrb[23].mxu0 }
0x1503   :  { %v2994_v6 = vpop.permute.xlu0 %2993 }
0x1504   :  { %v2996_v8 = vunpack.i.h.bf16 %v2994_v6  ;;  %v2995_v10 = vunpack.i.l.bf16 %v2994_v6  ;;  %v1050_v6 = vrot.slane %v3563_v32, 4 }
0x1506   :  { %v1102_v18 = vsel %vm281_vm7, %v3690_v15, %v2995_v10  ;;  %v1108_v20 = vsel %vm281_vm7, %v3694_v17, %v2996_v8  ;;  %v1056_v8 = vsel %vm246_vm6, %v3600_v34, %v1054_v0  ;;  %v1052_v10 = vsel %vm246_vm6, %v3581_v14, %v1050_v6 }
0x1507   :  { %v1145_v16 = vsel %vm118_vm0, %v1102_v18, %v1108_v20  ;;  %v1110_v18 = vrot.slane %v1056_v8, 4 }
0x1508   :  { %1225 = vmatmul.mubr.f32.vlgmr.msra.gmra.mrb[24].mxu1 %v1145_v16  ;;  %v1116_v16 = vrot.slane %v1052_v10, 4 }
0x1509   :  { %1230 = vmatprep.mubr.f32.mxu1 %v3203_v2  ;;  %1441 = vmatpush1.bf16.msra.mxu1 %v3640_v58 }
0x150a   :  { %1442 = vmatprep.subr.bf16.mxu1 %v3643_v59 }
0x150d   :  { %1443 = vmatpush1.bf16.msra.mxu1 %v3646_v3 }
0x150e   :  { %1444 = vmatprep.subr.bf16.mxu1 %v3649_v13 }
0x1511   :  { %1445 = vmatpush1.bf16.msra.mxu1 %v3652_v19 }
0x1512   :  { %1446 = vmatprep.subr.bf16.mxu1 %v3655_v62 }
0x1515   :  { %1447 = vmatpush1.bf16.msra.mxu1 %v3659_v33 }
0x1516   :  { %1594 = vmatprep.subr.bf16.mxu1 %v3637_v55 }
0x15db   :  { %v1226_v9 = vpop.f32.mrb[24].mxu1 }
0x15dc   :  { %v1228_v24 = vpop.f32.mrb[25].mxu1  ;;  %v1227_v30 = vadd.f32 %v1226_v9, %v3720_v29 }
0x15dd   :  { %v1229_v11 = vadd.f32 %v1228_v24, %v3715_v5 }
0x15de   :  { %v1330_v41 = vadd.f32 %v1323_v7, %v1227_v30  ;;  %v2997_v7 = vpack.i.bf16 %v1116_v16, %v1110_v18 }
0x15df   :  { %v1331_v25 = vadd.f32 %v1325_v42, %v1229_v11  ;;  %v1140_v42 = vrot.slane %v3690_v15, 4 }
0x15e1   :  { %3084 = vtanh.f32 %v1331_v25  ;;  %v3007_v61 = vpack.i.bf16 %v1140_v42, %v1134_v12 }
0x15e2   :  { %3086 = vtanh.f32 %v1330_v41 }
0x15eb   :  { %v3085_v28 = vpop.eup %3084 }
0x15ec   :  { %1340 = vrot.lane.b32.xlu1 %v3085_v28, %s3205_s4  ;;  %v3087_v37 = vpop.eup %3086  ;;  %v1335_v44 = vmul.f32 0.5, %v3085_v28 }
0x15ed   :  { %v1334_v60 = vmul.f32 0.5, %v3087_v37 }
0x15ee   :  { %v1337_v45 = vadd.f32 0.5, %v1335_v44 }
0x15ef   :  { %v1336_v27 = vadd.f32 0.5, %v1334_v60 }
0x15f1   :  { %v1338_v26 = vmul.f32 0.0, %v1336_v27 }
0x165e   :  { %v1341_v31 = vpop.permute.xlu1 %1340 }
0x165f   :  { %v1343_v35 = vmul.f32 %v1341_v31, %v1336_v27 }
0x1661   :  { %1345 = vrot.lane.b32.xlu0 %v1343_v35, %s3205_s4 }
0x16d3   :  { %v1346_v36 = vpop.permute.xlu0 %1345 }
0x16d4   :  { %v1348_v39 = vadd.f32 %v1346_v36, %v1338_v26 }
0x16d6   :  { %3088 = vtanh.f32 %v1348_v39  ;;  %v1415_v41 = vrot.slane %v1348_v39, 4 }
0x16e0   :  { %v3089_v40 = vpop.eup %3088 }
0x16e1   :  { %1351 = vrot.lane.b32.xlu1 %v3089_v40, %s3205_s4 }
0x1753   :  { %v1352_v47 = vpop.permute.xlu1 %1351 }
0x1754   :  { %v3725_v48 = vmul.f32 %v1352_v47, %v1337_v45 }
0x1756   :  { %v1355_v49 = vpack.c.bf16 %v3725_v48, %v3725_v48 }
0x1758   :  { %2812 = vmatmul.mubr.msk.bf16.vlgmr.msra.gmra.mrb[24].mxu0 %vm281_vm7, %v1355_v49 }
0x1759   :  { %1514 = vmatpush1.bf16.msra.mxu0 %v3640_v58  ;;  %1545 = vmatprep.mubr.bf16.mxu0 %v3202_v1 }
0x175a   :  { %1515 = vmatprep.subr.bf16.mxu0 %v3643_v59 }
0x175d   :  { %1516 = vmatpush1.bf16.msra.mxu0 %v3646_v3 }
0x175e   :  { %1517 = vmatprep.subr.bf16.mxu0 %v3649_v13 }
0x1761   :  { %1518 = vmatpush1.bf16.msra.mxu0 %v3652_v19 }
0x1762   :  { %1519 = vmatprep.subr.bf16.mxu0 %v3655_v62 }
0x1765   :  { %1520 = vmatpush1.bf16.msra.mxu0 %v3659_v33 }
0x1766   :  { %1667 = vmatprep.subr.bf16.mxu0 %v3637_v55 }
0x182b   :  { %v1393_v63 = vpop.f32.mrb[24].mxu0 }
0x182c   :  { %v1395_v51 = vpop.f32.mrb[25].mxu0  ;;  %v1402_v32 = vrot.slane %v1393_v63, 4 }
0x182d   :  { %v1403_v53 = vrot.slane %v1395_v51, 4  ;;  %v1397_v54 = vpop.f32.mrb[26].mxu0 }
0x182e   :  { %v1398_v56 = vpop.f32.mrb[27].mxu0  ;;  %v1406_v34 = vadd.f32 %v1402_v32, %v1227_v30 }
0x182f   :  { %v1407_v57 = vadd.f32 %v1403_v53, %v1229_v11 }
0x1831   :  { %3090 = vtanh.f32 %v1407_v57 }
0x1832   :  { %3092 = vtanh.f32 %v1406_v34 }
0x183b   :  { %v3091_v20 = vpop.eup %3090 }
0x183c   :  { %1419 = vrot.lane.b32.xlu0 %v3091_v20, %s3205_s4  ;;  %v3093_v21 = vpop.eup %3092  ;;  %v1411_v53 = vmul.f32 0.5, %v3091_v20 }
0x183d   :  { %v1410_v14 = vmul.f32 0.5, %v3093_v21 }
0x183e   :  { %v1413_v54 = vadd.f32 0.5, %v1411_v53 }
0x183f   :  { %v1412_v4 = vadd.f32 0.5, %v1410_v14 }
0x1840   :  { %2998 = vrot.lane.b32.xlu0 %v2997_v7, %s3205_s4 }
0x1841   :  { %v1417_v37 = vmul.f32 %v1415_v41, %v1412_v4 }
0x1844   :  { %3008 = vrot.lane.b32.xlu0 %v3007_v61, %s3205_s4 }
0x18ae   :  { %v1420_v9 = vpop.permute.xlu0 %1419 }
0x18af   :  { %v1422_v24 = vmul.f32 %v1420_v9, %v1412_v4 }
0x18b1   :  { %1424 = vrot.lane.b32.xlu1 %v1422_v24, %s3205_s4 }
0x18b2   :  { %v2999_v11 = vpop.permute.xlu0 %2998 }
0x18b3   :  { %v3001_v25 = vunpack.i.h.bf16 %v2999_v11  ;;  %v3000_v15 = vunpack.i.l.bf16 %v2999_v11 }
0x18b5   :  { %3003 = vrot.lane.b32.xlu1 %v3617_v46, %s3205_s4  ;;  %v1114_v17 = vsel %vm281_vm7, %v3611_v43, %v3000_v15  ;;  %v1120_v28 = vsel %vm281_vm7, %v3607_v38, %v3001_v25 }
0x18b6   :  { %v1146_v30 = vsel %vm118_vm0, %v1114_v17, %v1120_v28  ;;  %v3009_v31 = vpop.permute.xlu0 %3008 }
0x18b7   :  { %1231 = vmatmul.mubr.f32.gmra.mrb[26].mxu1 %v1146_v30  ;;  %v3011_v26 = vunpack.i.h.bf16 %v3009_v31  ;;  %v3010_v46 = vunpack.i.l.bf16 %v3009_v31 }
0x18b8   :  { %1236 = vmatprep.mubr.f32.mxu1 %v3203_v2 }
0x18b9   :  { %v1138_v39 = vsel %vm281_vm7, %v3673_v50, %v3010_v46  ;;  %v1144_v45 = vsel %vm281_vm7, %v3676_v52, %v3011_v26 }
0x18ba   :  { %v1148_v47 = vsel %vm118_vm0, %v1138_v39, %v1144_v45 }
0x1923   :  { %v1425_v60 = vpop.permute.xlu1 %1424 }
0x1924   :  { %v1427_v27 = vadd.f32 %v1425_v60, %v1417_v37 }
0x1926   :  { %3094 = vtanh.f32 %v1427_v27  ;;  %v1490_v11 = vrot.slane %v1427_v27, 4 }
0x1927   :  { %v3004_v35 = vpop.permute.xlu1 %3003 }
0x1928   :  { %v3006_v36 = vunpack.i.h.bf16 %v3004_v35  ;;  %v3005_v40 = vunpack.i.l.bf16 %v3004_v35 }
0x192a   :  { %v1126_v43 = vsel %vm281_vm7, %v1052_v10, %v3005_v40  ;;  %v1132_v38 = vsel %vm281_vm7, %v1056_v8, %v3006_v36 }
0x192b   :  { %v1147_v44 = vsel %vm118_vm0, %v1126_v43, %v1132_v38 }
0x192c   :  { %1237 = vmatmul.mubr.f32.gmra.mrb[28].mxu1 %v1147_v44 }
0x192d   :  { %1242 = vmatprep.mubr.f32.mxu1 %v3203_v2 }
0x1930   :  { %v3095_v49 = vpop.eup %3094  ;;  %1243 = vmatmul.mubr.f32.gmra.mrb[30].mxu1 %v1148_v47 }
0x1931   :  { %1430 = vrot.lane.b32.xlu1 %v3095_v49, %s3205_s4  ;;  %1472 = vmatprep.mubr.bf16.mxu1 %v3202_v1 }
0x198a   :  { %v1232_v63 = vpop.f32.mrb[26].mxu1 }
0x198b   :  { %v1234_v51 = vpop.f32.mrb[27].mxu1  ;;  %v1233_v32 = vadd.f32 %v1232_v63, %v3720_v29 }
0x198c   :  { %v1235_v18 = vadd.f32 %v1234_v51, %v3715_v5 }
0x19a3   :  { %v1431_v56 = vpop.permute.xlu1 %1430 }
0x19a4   :  { %v3770_v57 = vmul.f32 %v1431_v56, %v1413_v54 }
0x19a6   :  { %v1434_v50 = vpack.c.bf16 %v3770_v57, %v3770_v57 }
0x19a8   :  { %v1436_v52 = vrot.slane %v1434_v50, 2 }
0x19aa   :  { %2813 = vmatmul.mubr.msk.bf16.vlgmr.msra.gmra.mrb[32].mxu1 %vm281_vm7, %v1436_v52 }
0x19ab   :  { %1595 = vmatpush1.bf16.msra.mxu1 %v3640_v58  ;;  %1626 = vmatprep.mubr.bf16.mxu1 %v3202_v1 }
0x19ac   :  { %1596 = vmatprep.subr.bf16.mxu1 %v3643_v59 }
0x19af   :  { %1597 = vmatpush1.bf16.msra.mxu1 %v3646_v3 }
0x19b0   :  { %1598 = vmatprep.subr.bf16.mxu1 %v3649_v13 }
0x19b3   :  { %1599 = vmatpush1.bf16.msra.mxu1 %v3652_v19 }
0x19b4   :  { %1600 = vmatprep.subr.bf16.mxu1 %v3655_v62 }
0x19b7   :  { %1601 = vmatpush1.bf16.msra.mxu1 %v3659_v33 }
0x19b8   :  { %1748 = vmatprep.subr.bf16.mxu1 %v3637_v55 }
0x19ff   :  { %v3784_v0 = vpop.f32.mrb[28].mxu1 }
0x1a00   :  { %v3786_v6 = vpop.f32.mrb[29].mxu1 }
0x1a03   :  { %v3788_v8 = vpop.f32.mrb[30].mxu1 }
0x1a04   :  { %v3790_v10 = vpop.f32.mrb[31].mxu1 }
0x1a7d   :  { %v1474_v20 = vpop.f32.mrb[32].mxu1 }
0x1a7e   :  { %v1476_v16 = vpop.f32.mrb[33].mxu1  ;;  %v1481_v34 = vadd.f32 %v1474_v20, %v1233_v32 }
0x1a7f   :  { %v1482_v7 = vadd.f32 %v1476_v16, %v1235_v18  ;;  %v1478_v42 = vpop.f32.mrb[34].mxu1 }
0x1a80   :  { %v1479_v12 = vpop.f32.mrb[35].mxu1  ;;  %v1241_v42 = vadd.f32 %v3786_v6, %v3715_v5 }
0x1a81   :  { %3096 = vtanh.f32 %v1482_v7 }
0x1a82   :  { %3098 = vtanh.f32 %v1481_v34 }
0x1a8b   :  { %v3097_v61 = vpop.eup %3096 }
0x1a8c   :  { %1494 = vrot.lane.b32.xlu0 %v3097_v61, %s3205_s4  ;;  %v3099_v21 = vpop.eup %3098  ;;  %v1486_v30 = vmul.f32 0.5, %v3097_v61 }
0x1a8d   :  { %v1485_v14 = vmul.f32 0.5, %v3099_v21 }
0x1a8e   :  { %v1488_v41 = vadd.f32 0.5, %v1486_v30 }
0x1a8f   :  { %v1487_v4 = vadd.f32 0.5, %v1485_v14 }
0x1a91   :  { %v1492_v25 = vmul.f32 %v1490_v11, %v1487_v4 }
0x1afe   :  { %v1495_v9 = vpop.permute.xlu0 %1494 }
0x1aff   :  { %v1497_v24 = vmul.f32 %v1495_v9, %v1487_v4  ;;  %v1239_v4 = vadd.f32 %v3784_v0, %v3720_v29 }
0x1b01   :  { %1499 = vrot.lane.b32.xlu1 %v1497_v24, %s3205_s4 }
0x1b73   :  { %v1500_v15 = vpop.permute.xlu1 %1499 }
0x1b74   :  { %v1502_v17 = vadd.f32 %v1500_v15, %v1492_v25 }
0x1b76   :  { %3100 = vtanh.f32 %v1502_v17 }
0x1b80   :  { %v3101_v28 = vpop.eup %3100 }
0x1b81   :  { %1505 = vrot.lane.b32.xlu0 %v3101_v28, %s3205_s4 }
0x1bf3   :  { %v1506_v37 = vpop.permute.xlu0 %1505 }
0x1bf4   :  { %v3797_v60 = vmul.f32 %v1506_v37, %v1488_v41 }
0x1bf6   :  { %v1509_v31 = vpack.c.bf16 %v3797_v60, %v3797_v60 }
0x1bf8   :  { %2814 = vmatmul.mubr.msk.bf16.vlgmr.msra.gmra.mrb[28].mxu0 %vm281_vm7, %v1509_v31 }
0x1bf9   :  { %1668 = vmatpush1.bf16.msra.mxu0 %v3640_v58  ;;  %1699 = vmatprep.mubr.bf16.mxu0 %v3202_v1 }
0x1bfa   :  { %1669 = vmatprep.subr.bf16.mxu0 %v3643_v59 }
0x1bfd   :  { %1670 = vmatpush1.bf16.msra.mxu0 %v3646_v3 }
0x1bfe   :  { %1671 = vmatprep.subr.bf16.mxu0 %v3649_v13 }
0x1c01   :  { %1672 = vmatpush1.bf16.msra.mxu0 %v3652_v19 }
0x1c02   :  { %1673 = vmatprep.subr.bf16.mxu0 %v3655_v62 }
0x1c05   :  { %1674 = vmatpush1.bf16.msra.mxu0 %v3659_v33 }
0x1c06   :  { %1821 = vmatprep.subr.bf16.mxu0 %v3637_v55  ;;  %v1569_v55 = vrot.slane %v1502_v17, 4 }
0x1ccb   :  { %v1547_v27 = vpop.f32.mrb[28].mxu0 }
0x1ccc   :  { %v1549_v35 = vpop.f32.mrb[29].mxu0  ;;  %v1556_v38 = vrot.slane %v1547_v27, 4 }
0x1ccd   :  { %v1557_v26 = vrot.slane %v1549_v35, 4  ;;  %v1551_v46 = vpop.f32.mrb[30].mxu0 }
0x1cce   :  { %v1552_v36 = vpop.f32.mrb[31].mxu0  ;;  %v1560_v44 = vadd.f32 %v1556_v38, %v1233_v32 }
0x1ccf   :  { %v1561_v40 = vadd.f32 %v1557_v26, %v1235_v18 }
0x1cd1   :  { %3102 = vtanh.f32 %v1561_v40 }
0x1cd2   :  { %3104 = vtanh.f32 %v1560_v44 }
0x1cdb   :  { %v3103_v43 = vpop.eup %3102 }
0x1cdc   :  { %1573 = vrot.lane.b32.xlu1 %v3103_v43, %s3205_s4  ;;  %v3105_v39 = vpop.eup %3104  ;;  %v1565_v50 = vmul.f32 0.5, %v3103_v43 }
0x1cdd   :  { %v1564_v45 = vmul.f32 0.5, %v3105_v39 }
0x1cde   :  { %v1567_v52 = vadd.f32 0.5, %v1565_v50 }
0x1cdf   :  { %v1566_v47 = vadd.f32 0.5, %v1564_v45 }
0x1ce1   :  { %v1571_v51 = vmul.f32 %v1569_v55, %v1566_v47 }
0x1d4e   :  { %v1574_v49 = vpop.permute.xlu1 %1573 }
0x1d4f   :  { %v1576_v63 = vmul.f32 %v1574_v49, %v1566_v47 }
0x1d51   :  { %1578 = vrot.lane.b32.xlu0 %v1576_v63, %s3205_s4 }
0x1dc3   :  { %v1579_v53 = vpop.permute.xlu0 %1578 }
0x1dc4   :  { %v1581_v54 = vadd.f32 %v1579_v53, %v1571_v51 }
0x1dc6   :  { %3106 = vtanh.f32 %v1581_v54  ;;  %v1644_v6 = vrot.slane %v1581_v54, 4 }
0x1dd0   :  { %v3107_v56 = vpop.eup %3106 }
0x1dd1   :  { %1584 = vrot.lane.b32.xlu1 %v3107_v56, %s3205_s4 }
0x1e43   :  { %v1585_v18 = vpop.permute.xlu1 %1584 }
0x1e44   :  { %v3814_v20 = vmul.f32 %v1585_v18, %v1567_v52  ;;  %v1247_v52 = vadd.f32 %v3790_v10, %v3715_v5 }
0x1e46   :  { %v1588_v16 = vpack.c.bf16 %v3814_v20, %v3814_v20 }
0x1e48   :  { %v1590_v7 = vrot.slane %v1588_v16, 2 }
0x1e4a   :  { %2815 = vmatmul.mubr.msk.bf16.vlgmr.msra.gmra.mrb[36].mxu1 %vm281_vm7, %v1590_v7 }
0x1e4b   :  { %1749 = vmatpush1.bf16.msra.mxu1 %v3640_v58  ;;  %1780 = vmatprep.mubr.bf16.mxu1 %v3202_v1 }
0x1e4c   :  { %1750 = vmatprep.subr.bf16.mxu1 %v3643_v59 }
0x1e4f   :  { %1751 = vmatpush1.bf16.msra.mxu1 %v3646_v3 }
0x1e50   :  { %1752 = vmatprep.subr.bf16.mxu1 %v3649_v13 }
0x1e53   :  { %1753 = vmatpush1.bf16.msra.mxu1 %v3652_v19 }
0x1e54   :  { %1754 = vmatprep.subr.bf16.mxu1 %v3655_v62 }
0x1e57   :  { %1755 = vmatpush1.bf16.msra.mxu1 %v3659_v33 }
0x1e58   :  { %2886 = vmatprep.subr.mxu1 %v3203_v2 }
0x1f1d   :  { %v1628_v12 = vpop.f32.mrb[36].mxu1 }
0x1f1e   :  { %v1630_v61 = vpop.f32.mrb[37].mxu1  ;;  %v1635_v9 = vadd.f32 %v1628_v12, %v1239_v4 }
0x1f1f   :  { %v1636_v32 = vadd.f32 %v1630_v61, %v1241_v42  ;;  %v1632_v34 = vpop.f32.mrb[38].mxu1 }
0x1f20   :  { %v1633_v21 = vpop.f32.mrb[39].mxu1 }
0x1f21   :  { %3108 = vtanh.f32 %v1636_v32  ;;  %v1245_v32 = vadd.f32 %v3788_v8, %v3720_v29 }
0x1f22   :  { %3110 = vtanh.f32 %v1635_v9 }
0x1f2b   :  { %v3109_v14 = vpop.eup %3108 }
0x1f2c   :  { %1648 = vrot.lane.b32.xlu0 %v3109_v14, %s3205_s4  ;;  %v3111_v24 = vpop.eup %3110  ;;  %v1640_v31 = vmul.f32 0.5, %v3109_v14 }
0x1f2d   :  { %v1639_v11 = vmul.f32 0.5, %v3111_v24 }
0x1f2e   :  { %v1642_v27 = vadd.f32 0.5, %v1640_v31 }
0x1f2f   :  { %v1641_v25 = vadd.f32 0.5, %v1639_v11 }
0x1f31   :  { %v1646_v28 = vmul.f32 %v1644_v6, %v1641_v25 }
0x1f9e   :  { %v1649_v15 = vpop.permute.xlu0 %1648 }
0x1f9f   :  { %v1651_v17 = vmul.f32 %v1649_v15, %v1641_v25 }
0x1fa1   :  { %1653 = vrot.lane.b32.xlu1 %v1651_v17, %s3205_s4 }
0x2013   :  { %v1654_v30 = vpop.permute.xlu1 %1653 }
0x2014   :  { %v1656_v41 = vadd.f32 %v1654_v30, %v1646_v28 }
0x2016   :  { %3112 = vtanh.f32 %v1656_v41  ;;  %v1723_v39 = vrot.slane %v1656_v41, 4 }
0x2020   :  { %v3113_v37 = vpop.eup %3112 }
0x2021   :  { %1659 = vrot.lane.b32.xlu0 %v3113_v37, %s3205_s4 }
0x2093   :  { %v1660_v0 = vpop.permute.xlu0 %1659 }
0x2094   :  { %v3835_v35 = vmul.f32 %v1660_v0, %v1642_v27 }
0x2096   :  { %v1663_v26 = vpack.c.bf16 %v3835_v35, %v3835_v35 }
0x2098   :  { %2816 = vmatmul.mubr.msk.bf16.vlgmr.msra.gmra.mrb[32].mxu0 %vm281_vm7, %v1663_v26 }
0x2099   :  { %1822 = vmatpush1.bf16.msra.mxu0 %v3640_v58  ;;  %1853 = vmatprep.mubr.bf16.mxu0 %v3202_v1 }
0x209a   :  { %1823 = vmatprep.subr.bf16.mxu0 %v3643_v59 }
0x209d   :  { %1824 = vmatpush1.bf16.msra.mxu0 %v3646_v3 }
0x209e   :  { %1825 = vmatprep.subr.bf16.mxu0 %v3649_v13 }
0x20a1   :  { %1826 = vmatpush1.bf16.msra.mxu0 %v3652_v19 }
0x20a2   :  { %1827 = vmatprep.subr.bf16.mxu0 %v3655_v62 }
0x20a5   :  { %1828 = vmatpush1.bf16.msra.mxu0 %v3659_v33 }
0x20a6   :  { %2901 = vmatprep.subr.mxu0 %v3203_v2 }
0x216b   :  { %v1701_v46 = vpop.f32.mrb[32].mxu0 }
0x216c   :  { %v1703_v36 = vpop.f32.mrb[33].mxu0  ;;  %v1710_v3 = vrot.slane %v1701_v46, 4 }
0x216d   :  { %v1711_v40 = vrot.slane %v1703_v36, 4  ;;  %v1705_v58 = vpop.f32.mrb[34].mxu0 }
0x216e   :  { %v1706_v43 = vpop.f32.mrb[35].mxu0  ;;  %v1714_v13 = vadd.f32 %v1710_v3, %v1239_v4 }
0x216f   :  { %v1715_v1 = vadd.f32 %v1711_v40, %v1241_v42 }
0x2171   :  { %3114 = vtanh.f32 %v1715_v1 }
0x2172   :  { %3116 = vtanh.f32 %v1714_v13 }
0x217b   :  { %v3115_v59 = vpop.eup %3114 }
0x217c   :  { %1727 = vrot.lane.b32.xlu1 %v3115_v59, %s3205_s4  ;;  %v3117_v19 = vpop.eup %3116  ;;  %v1719_v55 = vmul.f32 0.5, %v3115_v59 }
0x217d   :  { %v1718_v38 = vmul.f32 0.5, %v3117_v19 }
0x217e   :  { %v1721_v51 = vadd.f32 0.5, %v1719_v55  ;;  %v1917_v55 = vrot.slane %v3797_v60, 4 }
0x217f   :  { %v1720_v62 = vadd.f32 0.5, %v1718_v38 }
0x2181   :  { %v1725_v45 = vmul.f32 %v1723_v39, %v1720_v62  ;;  %v1909_v39 = vrot.slane %v3835_v35, 4 }
0x21ee   :  { %v1728_v44 = vpop.permute.xlu1 %1727 }
0x21ef   :  { %v1730_v33 = vmul.f32 %v1728_v44, %v1720_v62  ;;  %v3207_v44 = vmov 1966171168  }
0x21f1   :  { %1732 = vrot.lane.b32.xlu0 %v1730_v33, %s3205_s4  ;;  %v1930_v33 = vunpack.c.l.s4 %v3207_v44 }
0x2263   :  { %v1733_v47 = vpop.permute.xlu0 %1732 }
0x2264   :  { %v1735_v49 = vadd.f32 %v1733_v47, %v1725_v45  ;;  %v1931_v45 = vunpack.c.0.s8 %v1930_v33  ;;  %v1913_v47 = vrot.slane %v3814_v20, 4 }
0x2266   :  { %3118 = vtanh.f32 %v1735_v49  ;;  %v1798_v5 = vrot.slane %v1735_v49, 4  ;;  %v1911_v49 = vsel %vm246_vm6, %v3814_v20, %v1909_v39 }
0x2270   :  { %v3119_v63 = vpop.eup %3118 }
0x2271   :  { %1738 = vrot.lane.b32.xlu1 %v3119_v63, %s3205_s4  ;;  %v3877_v63 = vsub.s32 %v1931_v45, %v3481_v22 }
0x22e3   :  { %v1739_v53 = vpop.permute.xlu1 %1738 }
0x22e4   :  { %v3852_v54 = vmul.f32 %v1739_v53, %v1721_v51  ;;  %v1915_v51 = vsel %vm246_vm6, %v3835_v35, %v1913_v47  ;;  %v2009_v53 = vcombine.high %v1911_v49, %v1911_v49 }
0x22e6   :  { %v1742_v56 = vpack.c.bf16 %v3852_v54, %v3852_v54 }
0x22e8   :  { %v1744_v50 = vrot.slane %v1742_v56, 2  ;;  %v1905_v56 = vrot.slane %v3852_v54, 4 }
0x22ea   :  { %2817 = vmatmul.mubr.msk.bf16.vlgmr.msra.gmra.mrb[40].mxu1 %vm281_vm7, %v1744_v50  ;;  %v1919_v50 = vsel %vm246_vm6, %v3852_v54, %v1917_v55  ;;  %v1907_v22 = vsel %vm246_vm6, %v3797_v60, %v1905_v56 }
0x22eb   :  { %2888 = vmatprep.mubr.msk.f32.mxu1 %vm3206_vm8, %v3203_v2  ;;  %v2060_v20 = vcombine.high %v1919_v50, %v1919_v50 }
0x22ed   :  { %v2067_v54 = vrot.slane %v2060_v20, %v3877_v63 }
0x23bd   :  { %v1782_v18 = vpop.f32.mrb[40].mxu1 }
0x23be   :  { %v1784_v16 = vpop.f32.mrb[41].mxu1  ;;  %v1789_v34 = vadd.f32 %v1782_v18, %v1245_v32 }
0x23bf   :  { %v1790_v7 = vadd.f32 %v1784_v16, %v1247_v52  ;;  %v1786_v42 = vpop.f32.mrb[42].mxu1  ;;  %v2016_v16 = vrot.slane %v2009_v53, %v3877_v63 }
0x23c0   :  { %v1787_v12 = vpop.f32.mrb[43].mxu1 }
0x23c1   :  { %3120 = vtanh.f32 %v1790_v7  ;;  %v1921_v7 = vrot.slane %v3770_v57, 4  ;;  %v2017_v12 = vcombine.high %v2016_v16, %v2016_v16  ;;  %v3902_v60 = vrot.slane %v2016_v16, %v3877_v63 }
0x23c2   :  { %3122 = vtanh.f32 %v1789_v34 }
0x23cb   :  { %v3121_v61 = vpop.eup %3120 }
0x23cc   :  { %1802 = vrot.lane.b32.xlu0 %v3121_v61, %s3205_s4  ;;  %v3123_v21 = vpop.eup %3122  ;;  %v1794_v17 = vmul.f32 0.5, %v3121_v61  ;;  %v1990_v61 = vrot.slane %v1907_v22, %v3877_v63 }
0x23cd   :  { %v1793_v14 = vmul.f32 0.5, %v3123_v21 }
0x23ce   :  { %v1796_v6 = vadd.f32 0.5, %v1794_v17  ;;  %v2032_v17 = vcombine.high %v3902_v60, %v3902_v60 }
0x23cf   :  { %v1795_v4 = vadd.f32 0.5, %v1793_v14 }
0x23d1   :  { %v1800_v10 = vmul.f32 %v1798_v5, %v1795_v4 }
0x243e   :  { %v1803_v9 = vpop.permute.xlu0 %1802 }
0x243f   :  { %v1805_v24 = vmul.f32 %v1803_v9, %v1795_v4  ;;  %v1991_v9 = vcombine.high %v1990_v61, %v1990_v61 }
0x2441   :  { %1807 = vrot.lane.b32.xlu1 %v1805_v24, %s3205_s4  ;;  %v2068_v24 = vcombine.high %v2067_v54, %v2067_v54 }
0x24b3   :  { %v1808_v11 = vpop.permute.xlu1 %1807 }
0x24b4   :  { %v1810_v25 = vadd.f32 %v1808_v11, %v1800_v10 }
0x24b6   :  { %3124 = vtanh.f32 %v1810_v25  ;;  %v1877_v3 = vrot.slane %v1810_v25, 4  ;;  %v3914_v25 = vrot.slane %v1990_v61, %v3877_v63 }
0x24b8   :  { %v2159_v44 = vrot.slane %v3914_v25, %v3484_v23 }
0x24c0   :  { %v3125_v15 = vpop.eup %3124 }
0x24c1   :  { %1813 = vrot.lane.b32.xlu0 %v3125_v15, %s3205_s4  ;;  %v1925_v15 = vrot.slane %v3725_v48, 4 }
0x2533   :  { %v1814_v29 = vpop.permute.xlu0 %1813 }
0x2534   :  { %v1816_v8 = vmul.f32 %v1814_v29, %v1796_v6 }
0x2536   :  { %v1817_v28 = vpack.c.bf16 %v1816_v8, %v1816_v8  ;;  %v1901_v18 = vrot.slane %v1816_v8, 4 }
0x2538   :  { %2818 = vmatmul.mubr.msk.bf16.vlgmr.msra.gmra.mrb[36].mxu0 %vm281_vm7, %v1817_v28  ;;  %v1903_v35 = vsel %vm246_vm6, %v3770_v57, %v1901_v18  ;;  %v3906_v57 = vrot.slane %v2017_v12, %v3877_v63  ;;  %v3922_v28 = vrot.slane %v1991_v9, %v3877_v63 }
0x2539   :  { %2903 = vmatprep.mubr.msk.f32.mxu0 %vm3206_vm8, %v3203_v2  ;;  %v1958_v21 = vcombine.high %v1903_v35, %v1903_v35 }
0x253a   :  { %v2163_v47 = vrot.slane %v3922_v28, %v3484_v23 }
0x253b   :  { %v1965_v10 = vrot.slane %v1958_v21, %v3877_v63 }
0x253d   :  { %v1973_v33 = vrot.slane %v1965_v10, %v3877_v63 }
0x260b   :  { %v1855_v30 = vpop.f32.mrb[36].mxu0 }
0x260c   :  { %v1857_v41 = vpop.f32.mrb[37].mxu0  ;;  %v1864_v46 = vrot.slane %v1855_v30, 4  ;;  %v3925_v30 = vrot.slane %v2067_v54, %v3877_v63 }
0x260d   :  { %v1865_v37 = vrot.slane %v1857_v41, 4  ;;  %v1859_v31 = vpop.f32.mrb[38].mxu0  ;;  %v3928_v41 = vrot.slane %v2068_v24, %v3877_v63 }
0x260e   :  { %v1860_v27 = vpop.f32.mrb[39].mxu0  ;;  %v1868_v36 = vadd.f32 %v1864_v46, %v1245_v32  ;;  %v1923_v32 = vsel %vm246_vm6, %v1816_v8, %v1921_v7  ;;  %v2033_v8 = vcombine.high %v3906_v57, %v3906_v57  ;;  %v2219_v55 = vrot.slane %v3925_v30, %v3484_v23 }
0x260f   :  { %v1869_v0 = vadd.f32 %v1865_v37, %v1247_v52  ;;  %v2041_v52 = vrot.slane %v1915_v51, %v3877_v63  ;;  %v2092_v4 = vrot.slane %v1923_v32, %v3877_v63  ;;  %v2223_v53 = vrot.slane %v3928_v41, %v3484_v23 }
0x2610   :  { %v1981_v7 = vcombine.high %v1973_v33, %v1973_v33 }
0x2611   :  { %3126 = vtanh.f32 %v1869_v0  ;;  %v2042_v42 = vcombine.high %v2041_v52, %v2041_v52  ;;  %v3896_v34 = vrot.slane %v2041_v52, %v3877_v63  ;;  %v2093_v6 = vcombine.high %v2092_v4, %v2092_v4 }
0x2612   :  { %3128 = vtanh.f32 %v1868_v36  ;;  %v1966_v0 = vcombine.high %v1965_v10, %v1965_v10  ;;  %v2006_v36 = vcombine.high %v3914_v25, %v3914_v25  ;;  %v2147_v25 = vrot.slane %v1981_v7, %v3484_v23 }
0x2613   :  { %v3899_v14 = vrot.slane %v2042_v42, %v3877_v63  ;;  %v2057_v5 = vcombine.high %v3896_v34, %v3896_v34  ;;  %v2199_v37 = vrot.slane %v3896_v34, %v3484_v23 }
0x2614   :  { %v1980_v39 = vrot.slane %v1966_v0, %v3877_v63  ;;  %v2167_v49 = vrot.slane %v2006_v36, %v3484_v23 }
0x2615   :  { %v2058_v11 = vcombine.high %v3899_v14, %v3899_v14  ;;  %v2203_v31 = vrot.slane %v3899_v14, %v3484_v23  ;;  %v3935_v27 = vrot.slane %v2057_v5, %v3484_v23 }
0x2616   :  { %v1982_v42 = vcombine.high %v1980_v39, %v1980_v39  ;;  %v2143_v9 = vrot.slane %v1980_v39, %v3484_v23 }
0x2617   :  { %v3940_v46 = vrot.slane %v2058_v11, %v3484_v23 }
0x261b   :  { %v3127_v26 = vpop.eup %3126 }
0x261c   :  { %1881 = vrot.lane.b32.xlu1 %v3127_v26, %s3205_s4  ;;  %v3129_v40 = vpop.eup %3128  ;;  %v1873_v29 = vmul.f32 0.5, %v3127_v26  ;;  %v2179_v26 = vrot.slane %v3902_v60, %v3484_v23 }
0x261d   :  { %v1872_v58 = vmul.f32 0.5, %v3129_v40  ;;  %v3945_v40 = vrot.slane %v2092_v4, %v3877_v63  ;;  %v2139_v4 = vrot.slane %v1973_v33, %v3484_v23 }
0x261f   :  { %v1874_v43 = vadd.f32 0.5, %v1872_v58  ;;  %v2183_v58 = vrot.slane %v3906_v57, %v3484_v23  ;;  %v2108_v51 = vcombine.high %v3945_v40, %v3945_v40  ;;  %v2239_v35 = vrot.slane %v3945_v40, %v3484_v23 }
0x2621   :  { %v1879_v13 = vmul.f32 %v1877_v3, %v1874_v43  ;;  %v2007_v3 = vcombine.high %v3922_v28, %v3922_v28  ;;  %v2247_v54 = vrot.slane %v2108_v51, %v3484_v23 }
0x2623   :  { %v2171_v18 = vrot.slane %v2007_v3, %v3484_v23 }
0x268e   :  { %v1882_v1 = vpop.permute.xlu1 %1881 }
0x268f   :  { %v1884_v59 = vmul.f32 %v1882_v1, %v1874_v43  ;;  %v3950_v43 = vrot.slane %v2032_v17, %v3484_v23  ;;  %v3953_v1 = vrot.slane %v2093_v6, %v3877_v63 }
0x2691   :  { %1886 = vrot.lane.b32.xlu0 %v1884_v59, %s3205_s4  ;;  %v1875_v59 = vadd.f32 0.5, %v1873_v29  ;;  %v2109_v56 = vcombine.high %v3953_v1, %v3953_v1  ;;  %v2243_v61 = vrot.slane %v3953_v1, %v3484_v23 }
0x2693   :  { %v2251_v24 = vrot.slane %v2109_v56, %v3484_v23 }
0x2703   :  { %v1887_v19 = vpop.permute.xlu0 %1886 }
0x2704   :  { %v1889_v38 = vadd.f32 %v1887_v19, %v1879_v13  ;;  %v2083_v13 = vcombine.high %v3925_v30, %v3925_v30  ;;  %v2084_v19 = vcombine.high %v3928_v41, %v3928_v41 }
0x2706   :  { %3130 = vtanh.f32 %v1889_v38  ;;  %v3982_v16 = vrot.slane %v2083_v13, %v3484_v23  ;;  %v2231_v22 = vrot.slane %v2084_v19, %v3484_v23 }
0x2710   :  { %v3131_v62 = vpop.eup %3130 }
0x2711   :  { %1892 = vrot.lane.b32.xlu1 %v3131_v62, %s3205_s4  ;;  %v3962_v62 = vrot.slane %v2033_v8, %v3484_v23 }
0x2783   :  { %v1893_v38 = vpop.permute.xlu1 %1892 }
0x2784   :  { %v1895_v45 = vmul.f32 %v1893_v38, %v1875_v59 }
0x2786   :  { %v1897_v50 = vrot.slane %v1895_v45, 4  ;;  %v1927_v52 = vsel %vm246_vm6, %v1895_v45, %v1925_v15  ;;  %v2151_v15 = vrot.slane %v1982_v42, %v3484_v23 }
0x2787   :  { %v2111_v20 = vcombine.high %v1927_v52, %v1927_v52 }
0x2788   :  { %v1899_v12 = vsel %vm246_vm6, %v3725_v48, %v1897_v50 }
0x2789   :  { %v1935_v32 = vrot.slane %v1899_v12, %v3877_v63  ;;  %v2118_v21 = vrot.slane %v2111_v20, %v3877_v63 }
0x278b   :  { %v1936_v5 = vcombine.high %v1935_v32, %v1935_v32  ;;  %v1943_v10 = vrot.slane %v1935_v32, %v3877_v63  ;;  %v2119_v48 = vcombine.high %v2118_v21, %v2118_v21  ;;  %v2126_v11 = vrot.slane %v2118_v21, %v3877_v63 }
0x278d   :  { %v1950_v17 = vrot.slane %v1936_v5, %v3877_v63  ;;  %v1951_v6 = vcombine.high %v1943_v10, %v1943_v10  ;;  %v2133_v29 = vrot.slane %v2119_v48, %v3877_v63  ;;  %v2134_v8 = vcombine.high %v2126_v11, %v2126_v11 }
0x278e   :  { %v2277_v28 = vsel %vm2276_vm9, %v1943_v10, %v2139_v4  ;;  %v2259_v40 = vrot.slane %v2126_v11, %v3484_v23 }
0x278f   :  { %v1952_v30 = vcombine.high %v1950_v17, %v1950_v17  ;;  %v2278_v41 = vsel %vm2276_vm9, %v1950_v17, %v2143_v9  ;;  %v2279_v0 = vsel %vm2276_vm9, %v1951_v6, %v2147_v25  ;;  %v2282_v36 = vsel %vm2281_vm10, %v2277_v28, %v2159_v44 }
0x2790   :  { %v2287_v63 = vsel %vm2286_vm11, %v2282_v36, %v2179_v26  ;;  %v2283_v1 = vsel %vm2281_vm10, %v2278_v41, %v2163_v47  ;;  %v2135_v59 = vcombine.high %v2133_v29, %v2133_v29  ;;  %v2263_v19 = vrot.slane %v2133_v29, %v3484_v23 }
0x2791   :  { %v2280_v3 = vsel %vm2276_vm9, %v1952_v30, %v2151_v15  ;;  %v2291_v13 = vsel %vm118_vm0, %v2287_v63, %v2199_v37  ;;  %v2288_v38 = vsel %vm2286_vm11, %v2283_v1, %v2183_v58  ;;  %v2284_v58 = vsel %vm2281_vm10, %v2279_v0, %v2167_v49 }
0x2792   :  { %v2296_v60 = vsel %vm2295_vm12, %v2291_v13, %v2219_v55  ;;  %v2292_v26 = vsel %vm118_vm0, %v2288_v38, %v2203_v31  ;;  %v2271_v44 = vrot.slane %v2135_v59, %v3484_v23  ;;  %v2285_v34 = vsel %vm2281_vm10, %v2280_v3, %v2171_v18 }
0x2793   :  { %v2301_v37 = vsel %vm2300_vm13, %v2296_v60, %v2239_v35  ;;  %v2297_v33 = vsel %vm2295_vm12, %v2292_v26, %v2223_v53  ;;  %v2290_v57 = vsel %vm2286_vm11, %v2285_v34, %v3962_v62  ;;  %v2289_v45 = vsel %vm2286_vm11, %v2284_v58, %v3950_v43 }
0x2794   :  { %v4036_v39 = vsel %vm2305_vm14, %v2301_v37, %v2259_v40  ;;  %v2302_v14 = vsel %vm2300_vm13, %v2297_v33, %v2243_v61  ;;  %v2294_v31 = vsel %vm118_vm0, %v2290_v57, %v3940_v46  ;;  %v2293_v55 = vsel %vm118_vm0, %v2289_v45, %v3935_v27 }
0x2795   :  { %v2310_v47 = vmul.f32 0.125, %v4036_v39  ;;  %2887 = vmatpush3.xpose.msk.msra.mxu1 %vm281_vm7, %v4036_v39  ;;  %v4047_v62 = vsel %vm2305_vm14, %v2302_v14, %v2263_v19  ;;  %v2299_v49 = vsel %vm2295_vm12, %v2294_v31, %v2231_v22  ;;  %v2267_v51 = vrot.slane %v2134_v8, %v3484_v23 }
0x2796   :  { %2891 = vmatprep.subr.mxu1 %v3203_v2  ;;  %v2304_v46 = vsel %vm2300_vm13, %v2299_v49, %v2251_v24  ;;  %v2298_v43 = vsel %vm2295_vm12, %v2293_v55, %v3982_v16  ;;  %v2311_v23 = vmul.f32 0.125, %v4047_v62  ;;  %vm2751_vm0 = vcmask 1041409  }
0x2797   :  { %v4058_v53 = vsel %vm2305_vm14, %v2304_v46, %v2271_v44  ;;  %v2303_v56 = vsel %vm2300_vm13, %v2298_v43, %v2247_v54 }
0x2798   :  { %2889 = vmatmul.mubr.msk.f32.vlgmr.msra.gmra.mrb[44].mxu1 %vm281_vm7, %v2310_v47  ;;  %v2313_v50 = vmul.f32 0.125, %v4058_v53  ;;  %2902 = vmatpush3.xpose.msk.msra.mxu0 %vm281_vm7, %v4058_v53  ;;  %v4066_v27 = vsel %vm2305_vm14, %v2303_v56, %v2267_v51 }
0x2799   :  { %2892 = vmatpush3.xpose.msk.msra.mxu1 %vm281_vm7, %v4047_v62  ;;  %2893 = vmatprep.mubr.msk.f32.mxu1 %vm3206_vm8, %v3203_v2  ;;  %v2312_v52 = vmul.f32 0.125, %v4066_v27 }
0x279a   :  { %2896 = vmatprep.subr.mxu1 %v3203_v2 }
0x279b   :  { %2904 = vmatmul.mubr.msk.f32.vlgmr.msra.gmra.mrb[40].mxu0 %vm281_vm7, %v2313_v50 }
0x279c   :  { %2894 = vmatmul.mubr.msk.f32.vlgmr.msra.gmra.mrb[46].mxu1 %vm281_vm7, %v2311_v23 }
0x279d   :  { %2897 = vmatpush3.xpose.msk.msra.mxu1 %vm281_vm7, %v4066_v27  ;;  %2898 = vmatprep.mubr.msk.f32.mxu1 %vm3206_vm8, %v3203_v2 }
0x27a0   :  { %2899 = vmatmul.mubr.msk.f32.vlgmr.msra.gmra.mrb[48].mxu1 %vm281_vm7, %v2312_v52 }
0x286b   :  { %v2386_v18 = vpop.f32.mrb[44].mxu1 }
0x286c   :  { %v2890_v16 = vpop.f32.mrb[45].mxu1  ;;  %v2619_v54 = vsel %vm2618_vm15, %v2386_v18, -inf }
0x286e   :  { %v2614_v20 = vpop.f32.mrb[40].mxu0 }
0x286f   :  { %v2462_v22 = vpop.f32.mrb[46].mxu1  ;;  %v2905_v7 = vpop.f32.mrb[41].mxu0  ;;  %v2628_v32 = vsel %vm2618_vm15, %v2614_v20, -inf }
0x2870   :  { %v2895_v42 = vpop.f32.mrb[47].mxu1  ;;  %v2622_v35 = vsel %vm2618_vm15, %v2462_v22, -inf }
0x2871   :  { %2623 = vmax.xlane.f32.xlu0 %v2622_v35 }
0x2873   :  { %v2538_v12 = vpop.f32.mrb[48].mxu1 }
0x2874   :  { %v2900_v61 = vpop.f32.mrb[49].mxu1  ;;  %v2625_v2 = vsel %vm2618_vm15, %v2538_v12, -inf }
0x2875   :  { %2620 = vmax.xlane.f32.xlu0 %v2619_v54  ;;  %2626 = vmax.xlane.f32.xlu1 %v2625_v2 }
0x2879   :  { %2629 = vmax.xlane.f32.xlu0 %v2628_v32 }
0x28fe   :  { %v2624_v21 = vpop.xlane.xlu0 %2623 }
0x28ff   :  { %v2632_v4 = vsub.f32 %v2462_v22, %v2624_v21 }
0x2901   :  { %v2637_v9 = vmul.f32 1.442695, %v2632_v4 }
0x2902   :  { %v2621_v24 = vpop.xlane.xlu0 %2620  ;;  %v2627_v5 = vpop.xlane.xlu1 %2626 }
0x2903   :  { %3132 = vpow2.f32 %v2637_v9  ;;  %v2631_v10 = vsub.f32 %v2386_v18, %v2621_v24  ;;  %v2633_v48 = vsub.f32 %v2538_v12, %v2627_v5 }
0x2905   :  { %v2635_v11 = vmul.f32 1.442695, %v2631_v10  ;;  %v2639_v25 = vmul.f32 1.442695, %v2633_v48 }
0x2906   :  { %v2630_v15 = vpop.xlane.xlu0 %2629 }
0x2907   :  { %3134 = vpow2.f32 %v2635_v11  ;;  %v2634_v17 = vsub.f32 %v2614_v20, %v2630_v15 }
0x2908   :  { %3136 = vpow2.f32 %v2639_v25 }
0x2909   :  { %v2641_v6 = vmul.f32 1.442695, %v2634_v17 }
0x290b   :  { %3138 = vpow2.f32 %v2641_v6 }
0x290d   :  { %v3133_v29 = vpop.eup %3132 }
0x290e   :  { %v2646_v8 = vsel %vm2618_vm15, %v3133_v29, 0.0 }
0x290f   :  { %2647 = vadd.xlane.f32.xlu1 %v2646_v8 }
0x2911   :  { %v3135_v28 = vpop.eup %3134 }
0x2912   :  { %v3137_v30 = vpop.eup %3136  ;;  %v2643_v41 = vsel %vm2618_vm15, %v3135_v28, 0.0 }
0x2913   :  { %2644 = vadd.xlane.f32.xlu1 %v2643_v41  ;;  %v2649_v0 = vsel %vm2618_vm15, %v3137_v30, 0.0 }
0x2914   :  { %2650 = vadd.xlane.f32.xlu0 %v2649_v0 }
0x2915   :  { %v3139_v36 = vpop.eup %3138 }
0x2916   :  { %v2652_v40 = vsel %vm2618_vm15, %v3139_v36, 0.0 }
0x2918   :  { %2653 = vadd.xlane.f32.xlu0 %v2652_v40 }
0x299c   :  { %v2648_v63 = vpop.xlane.xlu1 %2647 }
0x299d   :  { %3140 = vrcp.f32 %v2648_v63 }
0x29a0   :  { %v2645_v1 = vpop.xlane.xlu1 %2644 }
0x29a1   :  { %3142 = vrcp.f32 %v2645_v1  ;;  %v2651_v59 = vpop.xlane.xlu0 %2650 }
0x29a2   :  { %3144 = vrcp.f32 %v2651_v59 }
0x29a5   :  { %v2654_v3 = vpop.xlane.xlu0 %2653 }
0x29a6   :  { %3146 = vrcp.f32 %v2654_v3 }
0x29a7   :  { %v3141_v13 = vpop.eup %3140 }
0x29a8   :  { %v2660_v19 = vmul.f32 %v3141_v13, %v3133_v29 }
0x29aa   :  { %v2670_v38 = vsel %vm2618_vm15, %v2660_v19, 0.0  ;;  %v2827_v19 = vld [vmem:[%s4116_s8] ss:$0 sm:$0xff] }
0x29ab   :  { %v3143_v60 = vpop.eup %3142  ;;  %v2671_v26 = vrot.slane %v2670_v38, 4 }
0x29ac   :  { %v3145_v44 = vpop.eup %3144  ;;  %v2659_v34 = vmul.f32 %v3143_v60, %v3135_v28 }
0x29ad   :  { %v2672_v37 = vadd.f32 %v2671_v26, %v2670_v38  ;;  %v2661_v33 = vmul.f32 %v3145_v44, %v3137_v30 }
0x29ae   :  { %v2663_v57 = vsel %vm2618_vm15, %v2659_v34, 0.0 }
0x29af   :  { %v2673_v58 = vrot.slane %v2672_v37, 2  ;;  %v2664_v14 = vrot.slane %v2663_v57, 4  ;;  %v2677_v31 = vsel %vm2618_vm15, %v2661_v33, 0.0 }
0x29b0   :  { %v3147_v45 = vpop.eup %3146  ;;  %v2678_v47 = vrot.slane %v2677_v31, 4 }
0x29b1   :  { %v2674_v49 = vadd.f32 %v2673_v58, %v2672_v37  ;;  %v2665_v55 = vadd.f32 %v2664_v14, %v2663_v57  ;;  %v2662_v46 = vmul.f32 %v3147_v45, %v3139_v36 }
0x29b2   :  { %v2679_v51 = vadd.f32 %v2678_v47, %v2677_v31 }
0x29b3   :  { %v2675_v43 = vrot.slane %v2674_v49, 1  ;;  %v2666_v56 = vrot.slane %v2665_v55, 2  ;;  %v2684_v50 = vsel %vm2618_vm15, %v2662_v46, 0.0 }
0x29b4   :  { %v2680_v23 = vrot.slane %v2679_v51, 2  ;;  %v2685_v52 = vrot.slane %v2684_v50, 4 }
0x29b5   :  { %v2676_v18 = vadd.f32 %v2675_v43, %v2674_v49  ;;  %v2667_v16 = vadd.f32 %v2666_v56, %v2665_v55  ;;  %v2828_v56 = vld [vmem:[#allocation2] ss:$0 sm:$0xff] }
0x29b6   :  { %v2681_v20 = vadd.f32 %v2680_v23, %v2679_v51  ;;  %v2686_v22 = vadd.f32 %v2685_v52, %v2684_v50 }
0x29b7   :  { %2695 = vbcast.lane.b32.xlu1 %v2676_v18, 256  ;;  %v2668_v7 = vrot.slane %v2667_v16, 1 }
0x29b8   :  { %v2682_v42 = vrot.slane %v2681_v20, 1  ;;  %v2687_v35 = vrot.slane %v2686_v22, 2 }
0x29b9   :  { %v2669_v12 = vadd.f32 %v2668_v7, %v2667_v16 }
0x29ba   :  { %v2683_v61 = vadd.f32 %v2682_v42, %v2681_v20  ;;  %v2688_v54 = vadd.f32 %v2687_v35, %v2686_v22 }
0x29bb   :  { %2692 = vbcast.lane.b32.xlu1 %v2669_v12, 256 }
0x29bc   :  { %2698 = vbcast.lane.b32.xlu0 %v2683_v61, 256  ;;  %v2689_v2 = vrot.slane %v2688_v54, 1 }
0x29be   :  { %v2690_v32 = vadd.f32 %v2689_v2, %v2688_v54 }
0x29c0   :  { %2701 = vbcast.lane.b32.xlu1 %v2690_v32, 256 }
0x2a29   :  { %v2696_v21 = vpop.permute.xlu1 %2695 }
0x2a2a   :  { %v2704_v4 = vmul.f32 %v2696_v21, %v4047_v62 }
0x2a2c   :  { %v2714_v9 = vsel %vm281_vm7, %v2704_v4, 0.0 }
0x2a2d   :  { %v2715_v24 = vrot.slane %v2714_v9, 4  ;;  %v2693_v5 = vpop.permute.xlu1 %2692 }
0x2a2e   :  { %v2703_v10 = vmul.f32 %v2693_v5, %v4036_v39  ;;  %v2699_v48 = vpop.permute.xlu0 %2698 }
0x2a2f   :  { %v2716_v11 = vadd.f32 %v2715_v24, %v2714_v9  ;;  %v2705_v25 = vmul.f32 %v2699_v48, %v4066_v27 }
0x2a30   :  { %v2707_v15 = vsel %vm281_vm7, %v2703_v10, 0.0 }
0x2a31   :  { %v2717_v17 = vrot.slane %v2716_v11, 2  ;;  %v2708_v6 = vrot.slane %v2707_v15, 4  ;;  %v2721_v29 = vsel %vm281_vm7, %v2705_v25, 0.0 }
0x2a32   :  { %v2722_v8 = vrot.slane %v2721_v29, 4  ;;  %v2702_v28 = vpop.permute.xlu1 %2701 }
0x2a33   :  { %v2718_v30 = vadd.f32 %v2717_v17, %v2716_v11  ;;  %v2709_v62 = vadd.f32 %v2708_v6, %v2707_v15  ;;  %v2706_v41 = vmul.f32 %v2702_v28, %v4058_v53 }
0x2a34   :  { %v2723_v0 = vadd.f32 %v2722_v8, %v2721_v29 }
0x2a35   :  { %v2719_v36 = vrot.slane %v2718_v30, 1  ;;  %v2710_v40 = vrot.slane %v2709_v62, 2  ;;  %v2728_v39 = vsel %vm281_vm7, %v2706_v41, 0.0 }
0x2a36   :  { %v2724_v63 = vrot.slane %v2723_v0, 2  ;;  %v2729_v1 = vrot.slane %v2728_v39, 4 }
0x2a37   :  { %v2711_v27 = vadd.f32 %v2710_v40, %v2709_v62  ;;  %v2720_v59 = vadd.f32 %v2719_v36, %v2718_v30 }
0x2a38   :  { %v2725_v3 = vadd.f32 %v2724_v63, %v2723_v0  ;;  %v2730_v13 = vadd.f32 %v2729_v1, %v2728_v39 }
0x2a39   :  { %v2712_v38 = vrot.slane %v2711_v27, 1  ;;  %v2743_v53 = vmul.f32 %v2827_v19, %v2720_v59 }
0x2a3a   :  { %v2726_v60 = vrot.slane %v2725_v3, 1  ;;  %v2731_v26 = vrot.slane %v2730_v13, 2 }
0x2a3b   :  { %v2713_v44 = vadd.f32 %v2712_v38, %v2711_v27  ;;  %v2750_v14 = vrot.slane %v2743_v53, 7 }
0x2a3c   :  { %v2727_v34 = vadd.f32 %v2726_v60, %v2725_v3  ;;  %v2732_v37 = vadd.f32 %v2731_v26, %v2730_v13 }
0x2a3d   :  { %v2742_v33 = vmul.f32 %v2827_v19, %v2713_v44 }
0x2a3e   :  { %v2733_v57 = vrot.slane %v2732_v37, 1  ;;  %v2744_v58 = vmul.f32 %v2827_v19, %v2727_v34 }
0x2a3f   :  { %v2752_v49 = vsel %vm2751_vm0, %v2750_v14, %v2742_v33 }
0x2a40   :  { %v2734_v31 = vadd.f32 %v2733_v57, %v2732_v37  ;;  %v2753_v45 = vrot.slane %v2744_v58, 6 }
0x2a42   :  { %v2745_v47 = vmul.f32 %v2827_v19, %v2734_v31  ;;  %v2755_v46 = vsel %vm2754_vm1, %v2753_v45, %v2752_v49 }
0x2a44   :  { %v2756_v55 = vrot.slane %v2745_v47, 5 }
0x2a46   :  { %v2758_v51 = vsel %vm2757_vm2, %v2756_v55, %v2755_v46 }
0x2a47   :  { %v2761_v43 = vsel %vm2760_vm3, %v2758_v51, 0.0 }
0x2a48   :  { %2762 = vadd.xlane.f32.xlu0 %v2761_v43 }
0x2ad5   :  { %v2763_v50 = vpop.xlane.xlu0 %2762 }
0x2ad6   :  { %v2771_v23 = vadd.f32 %v2828_v56, %v2763_v50 }
0x2ad8   :  { %2773 = vst.msk [vmem:[%s4118_s10] sm:$0xf] %vm2772_vm4, %v2771_v23 }
0x2ad9   :  { %2778 = vsyncpa [#allocation4], 1 }
0x2ada   :  { %2779 = vsyncpa [#allocation6], 1 }

</bundles_post_ra>
